<compile_context>
chip_gen: v6e
topology: v6e:2x2x1
jax: 0.10.0
libtpu: 0.0.40
codegen_flags: <defaults>
</compile_context>

<pallas_src>
import functools
import math

import jax
import jax.numpy as jnp
import numpy as np
from jax.experimental import pallas as pl
from jax.experimental.pallas import tpu as pltpu


def _interp_matrix(out_size: int, in_size: int) -> np.ndarray:
    """align_corners=True 1-D linear interpolation matrix, shape (out, in)."""
    if out_size == 1:
        src = np.zeros((1,), np.float64)
    else:
        src = np.arange(out_size, dtype=np.float64) * (in_size - 1) / (out_size - 1)
    lo = np.clip(np.floor(src).astype(np.int64), 0, in_size - 1)
    hi = np.minimum(lo + 1, in_size - 1)
    frac = src - lo
    mat = np.zeros((out_size, in_size), np.float64)
    rows = np.arange(out_size)
    np.add.at(mat, (rows, lo), 1.0 - frac)
    np.add.at(mat, (rows, hi), frac)
    return mat.astype(np.float32)


def _pick_batch(nc: int, vol_bytes: int, d_out: int) -> int:
    """How many (N*C) volumes to process per grid step."""
    # ~6 MiB working set per step; Pallas double-buffers the HBM<->VMEM blocks,
    # so total VMEM stays well under the scoped limit on all chips.
    budget = 6 << 20
    feasible = [b for b in range(1, nc + 1)
                if nc % b == 0 and b * vol_bytes <= budget] or [1]
    # Prefer >=2 grid steps (keeps both v7x TensorCores busy), sublane-aligned
    # output rows, then the largest batch (amortize per-step overhead / DMA).
    return max(feasible, key=lambda b: ((nc // b) >= 2, (b * d_out) % 8 == 0, b))


def _resize_kernel(x_ref, awt_ref, aht_ref, adb_ref, o_ref, *,
                   b, d_in, h_in, w_in, d_out, h_out, w_out):
    bd = b * d_in
    x = x_ref[...].astype(jnp.float32)                           # (B, Di, Hi, Wi)

    # --- W axis: one 2-D MXU matmul, M = B*Di*Hi ---------------------------
    t = jnp.dot(x.reshape(bd * h_in, w_in), awt_ref[...],
                preferred_element_type=jnp.float32)              # (B*Di*Hi, Wo)

    # --- H axis: one XLU transpose of the last two dims + one matmul -------
    t = jnp.swapaxes(t.reshape(bd, h_in, w_out), 1, 2)           # (B*Di, Wo, Hi)
    t = jnp.dot(t.reshape(bd * w_out, h_in), aht_ref[...],
                preferred_element_type=jnp.float32)              # (B*Di*Wo, Ho)
    t = jnp.swapaxes(t.reshape(bd, w_out, h_out), 1, 2)          # (B*Di, Ho, Wo)
    t = t.reshape(bd, h_out * w_out)                             # lane-dense rhs

    # --- D axis + NC batch + pre/post scale: one MXU matmul ----------------
    # adb is block-diagonal (B*Do, B*Di) with the scalar factor folded in.
    out = jnp.dot(adb_ref[...], t,
                  preferred_element_type=jnp.float32)            # (B*Do, Ho*Wo)

    o_ref[...] = out.astype(o_ref.dtype)                         # lane-dense store


def resize_transform(x, scale_factor):
    """x: (N, C, D, H, W) float32. Returns resized (and scaled) field."""
    if scale_factor == 1:
        return x
    n, c, d_in, h_in, w_in = x.shape
    # PyTorch: output size = floor(input_size * scale_factor)
    d_out = int(math.floor(d_in * scale_factor))
    h_out = int(math.floor(h_in * scale_factor))
    w_out = int(math.floor(w_in * scale_factor))

    pre = float(scale_factor) if scale_factor > 1 else 1.0
    post = float(scale_factor) if scale_factor < 1 else 1.0

    # Pre-transposed (K, N) interp matrices; pre/post scalars folded into depth matrix.
    aw_t = jnp.asarray(_interp_matrix(w_out, w_in).T)            # (Wi, Wo)
    ah_t = jnp.asarray(_interp_matrix(h_out, h_in).T)            # (Hi, Ho)
    ad = _interp_matrix(d_out, d_in) * np.float32(pre * post)    # (Do, Di)

    nc = n * c
    x_flat = x.reshape(nc, d_in, h_in, w_in)

    # Working-set estimate per volume (input + intermediates + output), f32.
    vol_bytes = 4 * (d_in * h_in * w_in + d_in * h_in * w_out
                     + d_in * w_out * h_out + d_out * h_out * w_out)
    b = _pick_batch(nc, vol_bytes, d_out)
    g = nc // b

    # Block-diagonal depth matrix: handles the per-step NC batch and the depth
    # interpolation (and the scalar factor) in a single 2-D matmul.
    adb = jnp.asarray(np.kron(np.eye(b, dtype=np.float32), ad))  # (B*Do, B*Di)

    flops = 2 * nc * (d_in * h_in * w_in * w_out
                      + d_in * w_out * h_in * h_out
                      + d_in * h_out * w_out * d_out)
    bytes_accessed = 4 * (nc * d_in * h_in * w_in
                          + nc * d_out * h_out * w_out
                          + w_in * w_out + h_in * h_out
                          + (b * d_out) * (b * d_in))

    kernel = functools.partial(
        _resize_kernel, b=b, d_in=d_in, h_in=h_in, w_in=w_in,
        d_out=d_out, h_out=h_out, w_out=w_out)

    out2d = pl.pallas_call(
        kernel,
        out_shape=jax.ShapeDtypeStruct((nc * d_out, h_out * w_out), x.dtype),
        grid=(g,),
        in_specs=[
            pl.BlockSpec((b, d_in, h_in, w_in), lambda i: (i, 0, 0, 0)),
            pl.BlockSpec((w_in, w_out), lambda i: (0, 0)),
            pl.BlockSpec((h_in, h_out), lambda i: (0, 0)),
            pl.BlockSpec((b * d_out, b * d_in), lambda i: (0, 0)),
        ],
        out_specs=pl.BlockSpec((b * d_out, h_out * w_out), lambda i: (i, 0)),
        compiler_params=pltpu.CompilerParams(
            dimension_semantics=("parallel",),
            vmem_limit_bytes=32 * 1024 * 1024),
        cost_estimate=pl.CostEstimate(
            flops=flops, transcendentals=0, bytes_accessed=bytes_accessed),
    )(x_flat, aw_t, ah_t, adb)

    # Rows are ordered (volume, d_out) -> direct reshape back to 5-D.
    return out2d.reshape(n, c, d_out, h_out, w_out)


# ---------------- numpy reference (gather-based trilinear, align_corners) ----
def _reference(x, factor):
    if factor == 1:
        return x
    xs = x * factor if factor > 1 else x

    def axis_interp(arr, axis, out_size):
        in_size = arr.shape[axis]
        if out_size == 1:
            src = np.zeros((1,), np.float64)
        else:
            src = np.arange(out_size, dtype=np.float64) * (in_size - 1) / (out_size - 1)
        lo = np.clip(np.floor(src).astype(np.int64), 0, in_size - 1)
        hi = np.minimum(lo + 1, in_size - 1)
        frac = src - lo
        a_lo = np.take(arr, lo, axis=axis)
        a_hi = np.take(arr, hi, axis=axis)
        shape = [1] * arr.ndim
        shape[axis] = out_size
        frac = frac.reshape(shape)
        return a_lo * (1.0 - frac) + a_hi * frac

    n, c, di, hi_, wi = x.shape
    do = int(math.floor(di * factor))
    ho = int(math.floor(hi_ * factor))
    wo = int(math.floor(wi * factor))
    y = axis_interp(xs, 2, do)
    y = axis_interp(y, 3, ho)
    y = axis_interp(y, 4, wo)
    if factor < 1:
        y = y * factor
    return y.astype(np.float32)


if __name__ == "__main__":
    key = jax.random.PRNGKey(0)
    # small flow field: batch=2, channels=3 (3-D displacement), spatial=8^3
    x = jax.random.normal(key, (2, 3, 8, 8, 8), dtype=jnp.float32)

    for factor in (2.0, 0.5, 1):
        y = resize_transform(x, factor)
        y = jax.block_until_ready(y)
        y_ref = _reference(np.asarray(x), factor)
        np.testing.assert_allclose(np.asarray(y), y_ref, rtol=2e-2, atol=2e-2)

    print("KERNEL_OK")
</pallas_src>

<mosaic_0001>
module attributes {stable_mosaic.version = 11 : i64} {
  func.func @_resize_kernel(%arg0: i32, %arg1: memref<3x8x8x8xf32, #tpu.memory_space<vmem>>, %arg2: memref<8x16xf32, #tpu.memory_space<vmem>>, %arg3: memref<8x16xf32, #tpu.memory_space<vmem>>, %arg4: memref<48x24xf32, #tpu.memory_space<vmem>>, %arg5: memref<48x256xf32, #tpu.memory_space<vmem>>) attributes {dimension_semantics = [#tpu.dimension_semantics<parallel>], iteration_bounds = array<i64: 2>, scalar_prefetch = 0 : i64, scratch_operands = 0 : i64, tpu.core_type = #tpu.core_type<tc>, window_params = [{transform_indices = @transform_0, window_bounds = array<i64: 3, 8, 8, 8>}, {pipeline_mode = #tpu.pipeline_mode<synchronous>, transform_indices = @transform_1, window_bounds = array<i64: 8, 16>}, {pipeline_mode = #tpu.pipeline_mode<synchronous>, transform_indices = @transform_2, window_bounds = array<i64: 8, 16>}, {pipeline_mode = #tpu.pipeline_mode<synchronous>, transform_indices = @transform_3, window_bounds = array<i64: 48, 24>}, {transform_indices = @transform_4, window_bounds = array<i64: 48, 256>}]} {
    %c0 = arith.constant 0 : index
    %c0_0 = arith.constant 0 : index
    %c0_1 = arith.constant 0 : index
    %c0_2 = arith.constant 0 : index
    %0 = vector.load %arg1[%c0, %c0_0, %c0_1, %c0_2] : memref<3x8x8x8xf32, #tpu.memory_space<vmem>>, vector<3x8x8x8xf32>
    %1 = vector.shape_cast %0 : vector<3x8x8x8xf32> to vector<192x8xf32>
    %c0_3 = arith.constant 0 : index
    %c0_4 = arith.constant 0 : index
    %2 = vector.load %arg2[%c0_3, %c0_4] : memref<8x16xf32, #tpu.memory_space<vmem>>, vector<8x16xf32>
    %cst = arith.constant dense<0.000000e+00> : vector<192x16xf32>
    %3 = tpu.matmul %1, %2, %cst {dimension_numbers = #tpu.dot_dimension_numbers<[1], [0], [0], [1], [0, 0, 1, 1], [], []>} : vector<192x8xf32>, vector<8x16xf32>, vector<192x16xf32> -> vector<192x16xf32>
    %4 = vector.shape_cast %3 : vector<192x16xf32> to vector<24x8x16xf32>
    %5 = tpu.transpose %4, [0, 2, 1] : vector<24x8x16xf32> -> vector<24x16x8xf32>
    %6 = vector.shape_cast %5 : vector<24x16x8xf32> to vector<384x8xf32>
    %c0_5 = arith.constant 0 : index
    %c0_6 = arith.constant 0 : index
    %7 = vector.load %arg3[%c0_5, %c0_6] : memref<8x16xf32, #tpu.memory_space<vmem>>, vector<8x16xf32>
    %cst_7 = arith.constant dense<0.000000e+00> : vector<384x16xf32>
    %8 = tpu.matmul %6, %7, %cst_7 {dimension_numbers = #tpu.dot_dimension_numbers<[1], [0], [0], [1], [0, 0, 1, 1], [], []>} : vector<384x8xf32>, vector<8x16xf32>, vector<384x16xf32> -> vector<384x16xf32>
    %9 = vector.shape_cast %8 : vector<384x16xf32> to vector<24x16x16xf32>
    %10 = tpu.transpose %9, [0, 2, 1] : vector<24x16x16xf32> -> vector<24x16x16xf32>
    %11 = vector.shape_cast %10 : vector<24x16x16xf32> to vector<24x256xf32>
    %c0_8 = arith.constant 0 : index
    %c0_9 = arith.constant 0 : index
    %12 = vector.load %arg4[%c0_8, %c0_9] : memref<48x24xf32, #tpu.memory_space<vmem>>, vector<48x24xf32>
    %cst_10 = arith.constant dense<0.000000e+00> : vector<48x256xf32>
    %13 = tpu.matmul %12, %11, %cst_10 {dimension_numbers = #tpu.dot_dimension_numbers<[1], [0], [0], [1], [0, 0, 1, 1], [], []>} : vector<48x24xf32>, vector<24x256xf32>, vector<48x256xf32> -> vector<48x256xf32>
    %c0_11 = arith.constant 0 : index
    %c0_12 = arith.constant 0 : index
    %14 = vector.load %arg5[%c0_11, %c0_12] : memref<48x256xf32, #tpu.memory_space<vmem>>, vector<48x256xf32>
    tpu.vector_store %arg5[%c0_11, %c0_12], %13 {strides = array<i32>} : memref<48x256xf32, #tpu.memory_space<vmem>>, vector<48x256xf32>,
    return
  }
  func.func @transform_0(%arg0: i32) -> (i32, i32, i32, i32) {
    %c0_i32 = arith.constant 0 : i32
    %c0_i32_0 = arith.constant 0 : i32
    %c0_i32_1 = arith.constant 0 : i32
    %c0_i32_2 = arith.constant 0 : i32
    return %arg0, %c0_i32, %c0_i32_0, %c0_i32_1 : i32, i32, i32, i32
  }
  func.func @transform_1(%arg0: i32) -> (i32, i32) {
    %c0_i32 = arith.constant 0 : i32
    %c0_i32_0 = arith.constant 0 : i32
    %c0_i32_1 = arith.constant 0 : i32
    return %c0_i32, %c0_i32_0 : i32, i32
  }
  func.func @transform_2(%arg0: i32) -> (i32, i32) {
    %c0_i32 = arith.constant 0 : i32
    %c0_i32_0 = arith.constant 0 : i32
    %c0_i32_1 = arith.constant 0 : i32
    return %c0_i32, %c0_i32_0 : i32, i32
  }
  func.func @transform_3(%arg0: i32) -> (i32, i32) {
    %c0_i32 = arith.constant 0 : i32
    %c0_i32_0 = arith.constant 0 : i32
    %c0_i32_1 = arith.constant 0 : i32
    return %c0_i32, %c0_i32_0 : i32, i32
  }
  func.func @transform_4(%arg0: i32) -> (i32, i32) {
    %c0_i32 = arith.constant 0 : i32
    %c0_i32_0 = arith.constant 0 : i32
    return %arg0, %c0_i32 : i32, i32
  }
}

</mosaic_0001>

<bundles_post_ra>
// kernel: tpu_custom_call.1
= control target key start
LH: loop header
LB: loop body
LE: loop exit
PB: predicated region body
PF: predicated region fallthrough
CT: control target
= control target key end

     0   :  { %9 = vsyncpa [#allocation3], 0  ;;  %s4920_s0 = inlined_call_operand.hbm [shape: f32[6,8,8,8], index: 0, kind: input, shape index: {}]   ;;  %s4921_s1 = inlined_call_operand.vmem [shape: f32[8,16], index: 1, kind: input, shape index: {}]   ;;  %s4922_s2 = inlined_call_operand.vmem [shape: f32[8,16], index: 2, kind: input, shape index: {}]   ;;  %s4923_s3 = inlined_call_operand.vmem [shape: f32[48,24], index: 3, kind: input, shape index: {}]   ;;  %s4924_s4 = inlined_call_operand.hbm [shape: f32[96,256], index: 4, kind: output, shape index: {}]  }
   0x1   :  { %11 = vsyncpa [#allocation3 + $0x1], 0 }
   0x2   :  { %12 = vsyncpa [#allocation4], 0 }
   0x3   :  { %14 = vsyncpa [#allocation4 + $0x1], 0  ;;  %s4225_s15 = smov 0   ;;  %s4227_s16 = smov 0  }
   0x4   :  { %s4229_s17 = smov 0   ;;  %s4231_s18 = smov 0  }
   0x5 LB: > { %s4246_s19 = sadd.s32 4294967295, %s4183_s18   ;;  %s3747_s20 = sadd.s32 4294967294, %s4183_s18   ;;  %s4183_s18 = sphi %s4231_s18, %s4938_s18   ;;  %s4179_s17 = sphi %s4229_s17, %s4937_s17   ;;  %s4175_s16 = sphi %s4227_s16, %s4936_s16   ;;  %s4171_s15 = sphi %s4225_s15, %s4935_s15  }
   0x6   : > { %s4250_s21 = sadd.s32 1, %s4183_s18   ;;  %s27_s22 = sadd.s32 1, %s4179_s17 }
   0x7   : > { %s24_s23 = ssub.s32 %s4183_s18, %s4250_s21  ;;  %p34_p0 = scmp.ne.s32.totalorder %s4179_s17, %s4175_s16 }
   0x8   : > { %p25_p1 = scmp.eq.s32.totalorder %s24_s23, 0  ;;  %p35_p2 = scmp.eq.s32.totalorder %s4183_s18, 0 }
   0x9   : > { %p40_p3 = scmp.ne.s32.totalorder %s4175_s16, %s4171_s15  ;;  %p41_p4 = scmp.eq.s32.totalorder %s4246_s19, 0 }
   0xa   : > { %s4262_s24 = scalar_select %p25_p1, %s4179_s17, %s27_s22  }
   0xb   : > { %p36_p5 = por %p35_p2, %p34_p0  ;;  %p4264_p6 = por %p41_p4, %p40_p3 }
   0xc   : > { %p127_p7 = scmp.eq.s32.totalorder %s4246_s19, 1  ;;  %p133_p8 = scmp.eq.s32.totalorder %s3747_s20, 1 }
   0xd   : > { %s4927_s25 = scalar_select %p4264_p6, 1, 0 }
   0xe   : > { %p4044_p10 = scmp.lt.s32.totalorder %s4183_s18, 2  ;;  %p4271_p11 = por %p127_p7, %p34_p0 }
   0xf   : > { %p4275_p12 = por %p133_p8, %p40_p3  ;;  %s162_s28 = sand.u32 1, %s4179_s17  }
  0x10   : > { %s4928_s26 = scalar_select %p4271_p11, 1, 0 }
  0x11   : > { %s4929_s27 = scalar_select %p4275_p12, 1, 0 }
  0x12   : > { %s3839_s29 = smul.u32 3072, %s4183_s18  ;;  %p4286_p13 = pnand %p4044_p10, %p36_p5 }
  0x13   : > { %s4029_s30 = smul.u32 192, %s162_s28  ;;  %s4292_s11 = scalar_lea.sflag [#allocation3], %s162_s28 }
  0x14   : > { %s4284_s7 = scalar_lea.hbm %s4920_s0, %s3839_s29  ;;  %p4093_p1 = pneg %p4286_p13 }
  0x15   : > { %s166_s9 = scalar_lea.vmem [#allocation2], %s4029_s30  ;;  %s4091_s12 = scalar_lea.hbm %s4284_s7, 3072 }
  0x16   : > { %s174_s10 = sshll.u32 %s166_s9, 4  ;;  %p4092_p0 = scmp.ne.s32.totalorder %s4284_s7, %s4091_s12  ;;  %s4290_s10 = int_to_ptr.vmem [resolvable:$true] %s174_s10 }
  0x17   : > { %s4096_s20 = scalar_lea.hbm %s4920_s0, 6144  ;;  %p4097_p4 = scmp.lt.s32.totalorder %s4284_s7, %s4920_s0 }
  0x18   : > { %p4094_p2 = pnand %p4093_p1, %p4092_p0  ;;  %p4098_p5 = scmp.lt.s32.totalorder %s4096_s20, %s4091_s12 }
  0x1a   : > { %p4095_p3 = pneg %p4094_p2  ;;  %p4099_p7 = por %p4098_p5, %p4097_p4 }
  0x1c   : > { %p4100_p8 = pnand %p4099_p7, %p4095_p3 }
  0x1e   : > { %4103 = shalt.err (!%p4100_p8)
}
  0x1f   : > { %s4104_s28 = scalar_lea.vmem %s4290_s10, 3072  ;;  %s4185_s29 = smov [#allocation2]  }
  0x20   : > { %p4105_p10 = scmp.ne.s32.totalorder %s4290_s10, %s4104_s28  ;;  %s4109_s30 = sshll.u32 %s4185_s29, 4  ;;  %s4110_s30 = int_to_ptr.vmem [resolvable:$false] %s4109_s30 }
  0x21   : > { %s4111_s5 = scalar_lea.vmem %s4110_s30, 6144  ;;  %p4112_p2 = scmp.lt.s32.totalorder %s4290_s10, %s4110_s30 }
  0x22   : > { %p4107_p9 = pnand %p4105_p10, %p4093_p1  ;;  %p4113_p12 = scmp.lt.s32.totalorder %s4111_s5, %s4104_s28 }
  0x24   : > { %p4108_p0 = pneg %p4107_p9  ;;  %p4114_p11 = por %p4113_p12, %p4112_p2 }
  0x26   : > { %p4115_p6 = pnand %p4114_p11, %p4108_p0 }
  0x28   : > { %4118 = shalt.err (!%p4115_p6)
}
  0x29   : > { %s4186_s6 = smov 128   ;;  %s4187_s9 = smov 8  }
  0x2a   : > { %4039 = dma.hbm_to_vmem [thread:$0]  (!%p4286_p13), %s4284_s7, 3072, %s4290_s10, %s4292_s11, %s4186_s6, %s4186_s6, %s4187_s9  }
  0x2b   : > { %p3752_p9 = scmp.ge.s32.totalorder %s4183_s18, 1  ;;  %p182_p1 = scmp.lt.s32.totalorder %s4183_s18, 3 }
  0x2d   : > { %p183_p3 = pnand %p3752_p9, %p182_p1 }
  0x2e   : > { %s4316_s12 = sand.u32 (!%p183_p3), 1, %s4175_s16   ;;  %p4931_p6 = scmp.ne.s32.totalorder (!%p183_p3), %s4927_s25, 0 }
  0x2f   : > { %186 = sbr.rel (%p183_p3) target bundleno = 1266 (0x4f2), region = 36  ;;  %s189_s14 = scalar_lea.sflag (!%p183_p3), [#allocation3], %s4316_s12 }
  0x30   : > { %s4030_s13 = smul.u32 (!%p183_p3), 192, %s4316_s12 }
  0x32   : > { %s4320_s20 = scalar_lea.vmem (!%p183_p3), [#allocation2], %s4030_s13 }
  0x34   : > { %4162 = dma.done.wait (%p4931_p6), %s189_s14, 3072  }
  0x35   : > { %4164 = vsyncadd (%p4931_p6), %s189_s14, 4294964224  ;;  %vm244_vm0 = vcmask 64512   ;;  %v243_v0 = vld [vmem:[%s4921_s1] sm:$0xff]  ;;  %v220_v2 = vld [vmem:[%s4320_s20 + $0x8] sm:$0xff]  ;;  %s4190_s11 = smov 64   ;;  %s4191_s22 = smov 16  }
  0x36   : > { %v219_v1 = vld [vmem:[%s4320_s20] sm:$0xff]  ;;  %3915 = vmatprep.subr.mxu0 %v243_v0  ;;  %v221_v3 = vld [vmem:[%s4320_s20 + $0x10] sm:$0xff]  ;;  %v222_v4 = vld [vmem:[%s4320_s20 + $0x18] sm:$0xff]  ;;  %s4192_s23 = smov 80   ;;  %s4193_s28 = smov 32   ;;  %vm3472_vm1 = vcmask 130048  }
  0x37   : > { %3917 = vmatprep.mubr.msk.f32.mxu0 %vm244_vm0, %v219_v1  ;;  %3916 = vmatpush3.msra.mxu0 %v243_v0  ;;  %v223_v5 = vld [vmem:[%s4320_s20 + $0x20] sm:$0xff]  ;;  %v224_v6 = vld [vmem:[%s4320_s20 + $0x28] sm:$0xff]  ;;  %v225_v7 = vld [vmem:[%s4320_s20 + $0x30] sm:$0xff]  ;;  %s4194_s29 = smov 48   ;;  %s4195_s30 = smov 96   ;;  %vm3476_vm2 = vcmask 261120  }
  0x38   : > { %3918 = vmatmul.mubr.msk.f32.vlgmr.msra.gmra.mxu0 %vm244_vm0, %v220_v2  ;;  %v226_v8 = vld [vmem:[%s4320_s20 + $0x38] sm:$0xff]  ;;  %v227_v9 = vld [vmem:[%s4320_s20 + $0x40] sm:$0xff]  ;;  %v228_v10 = vld [vmem:[%s4320_s20 + $0x48] sm:$0xff]  ;;  %s4196_s5 = smov 112   ;;  %vm3480_vm3 = vcmask 392192   ;;  %vm3484_vm4 = vcmask 523264  }
  0x39   : > { %3920 = vmatprep.mubr.msk.f32.mxu0 %vm244_vm0, %v221_v3  ;;  %v229_v11 = vld [vmem:[%s4320_s20 + $0x50] sm:$0xff]  ;;  %v230_v12 = vld [vmem:[%s4320_s20 + $0x58] sm:$0xff]  ;;  %v231_v13 = vld [vmem:[%s4320_s20 + $0x60] sm:$0xff]  ;;  %vm3488_vm5 = vcmask 654336   ;;  %vm3492_vm6 = vcmask 785408   ;;  %vm3496_vm7 = vcmask 916480  }
  0x3a   : > { %v232_v14 = vld [vmem:[%s4320_s20 + $0x68] sm:$0xff]  ;;  %v233_v15 = vld [vmem:[%s4320_s20 + $0x70] sm:$0xff]  ;;  %v234_v16 = vld [vmem:[%s4320_s20 + $0x78] sm:$0xff]  ;;  %vm3527_vm8 = vcmask 195584   ;;  %p4932_p12 = scmp.ne.s32.totalorder %s4928_s26, 0 }
  0x3b   : > { %v235_v17 = vld [vmem:[%s4320_s20 + $0x80] sm:$0xff]  ;;  %v236_v18 = vld [vmem:[%s4320_s20 + $0x88] sm:$0xff]  ;;  %v237_v19 = vld [vmem:[%s4320_s20 + $0x90] sm:$0xff] }
  0x3c   : > { %3921 = vmatmul.mubr.msk.f32.gmra.mxu0 %vm244_vm0, %v222_v4  ;;  %v238_v20 = vld [vmem:[%s4320_s20 + $0x98] sm:$0xff]  ;;  %v239_v21 = vld [vmem:[%s4320_s20 + $0xa0] sm:$0xff]  ;;  %v240_v22 = vld [vmem:[%s4320_s20 + $0xa8] sm:$0xff] }
  0x3d   : > { %3923 = vmatprep.mubr.msk.f32.mxu0 %vm244_vm0, %v223_v5  ;;  %v241_v23 = vld [vmem:[%s4320_s20 + $0xb0] sm:$0xff]  ;;  %v242_v24 = vld [vmem:[%s4320_s20 + $0xb8] sm:$0xff]  ;;  %v1270_v28 = vld [vmem:[%s4922_s2] sm:$0xff]  ;;  %s3660_s20 = scalar_lea.sflag [#allocation4], %s4316_s12 }
  0x3e   : > { %4027 = vmatprep.subr.mxu1 %v1270_v28  ;;  %3953 = vmatprep.subr.mxu0 %v1270_v28 }
  0x3f   : > { %4028 = vmatpush3.msra.mxu1 %v1270_v28  ;;  %3954 = vmatpush3.msra.mxu0 %v1270_v28 }
  0x40   : > { %3924 = vmatmul.mubr.msk.f32.gmra.mxu0 %vm244_vm0, %v224_v6 }
  0x41   : > { %3926 = vmatprep.mubr.msk.f32.mxu0 %vm244_vm0, %v225_v7 }
  0x44   : > { %3927 = vmatmul.mubr.msk.f32.gmra.mxu0 %vm244_vm0, %v226_v8 }
  0x45   : > { %3929 = vmatprep.mubr.msk.f32.mxu0 %vm244_vm0, %v227_v9 }
  0x48   : > { %3930 = vmatmul.mubr.msk.f32.gmra.mxu0 %vm244_vm0, %v228_v10 }
  0x49   : > { %3932 = vmatprep.mubr.msk.f32.mxu0 %vm244_vm0, %v229_v11 }
  0x4c   : > { %3933 = vmatmul.mubr.msk.f32.gmra.mxu0 %vm244_vm0, %v230_v12 }
  0x4d   : > { %3935 = vmatprep.mubr.msk.f32.mxu0 %vm244_vm0, %v231_v13 }
  0x50   : > { %3936 = vmatmul.mubr.msk.f32.gmra.mxu0 %vm244_vm0, %v232_v14 }
  0x51   : > { %3938 = vmatprep.mubr.msk.f32.mxu0 %vm244_vm0, %v233_v15 }
  0x54   : > { %3939 = vmatmul.mubr.msk.f32.gmra.mxu0 %vm244_vm0, %v234_v16 }
  0x55   : > { %3941 = vmatprep.mubr.msk.f32.mxu0 %vm244_vm0, %v235_v17 }
  0x58   : > { %3942 = vmatmul.mubr.msk.f32.gmra.mxu0 %vm244_vm0, %v236_v18 }
  0x59   : > { %3944 = vmatprep.mubr.msk.f32.mxu0 %vm244_vm0, %v237_v19 }
  0x5c   : > { %3945 = vmatmul.mubr.msk.f32.gmra.mxu0 %vm244_vm0, %v238_v20 }
  0x5d   : > { %3947 = vmatprep.mubr.msk.f32.mxu0 %vm244_vm0, %v239_v21 }
  0x60   : > { %3948 = vmatmul.mubr.msk.f32.gmra.mxu0 %vm244_vm0, %v240_v22 }
  0x61   : > { %3950 = vmatprep.mubr.msk.f32.mxu0 %vm244_vm0, %v241_v23 }
  0x64   : > { %3951 = vmatmul.mubr.msk.f32.gmra.mxu0 %vm244_vm0, %v242_v24 }
  0xf8   : > { %v3919_v25 = vpop.f32.mrf.mxu0 }
  0xfa   : > { %v383_v26 = vpop.f32.mrf.mxu0 }
  0xfc   : > { %v3922_v27 = vpop.f32.mrf.mxu0 }
  0xfd   : > { %598 = vxpose.xlu0.b32.start.end [1/1] (short) (narrow) %v3922_v27, 16 }
  0xfe   : > { %v393_v29 = vpop.f32.mrf.mxu0 }
 0x100   : > { %v3925_v30 = vpop.f32.mrf.mxu0 }
 0x101   : > { %662 = vxpose.xlu1.b32.start.end [1/1] (short) (narrow) %v3925_v30, 16 }
 0x102   : > { %v403_v31 = vpop.f32.mrf.mxu0 }
 0x103   : > { %630 = vxpose.xlu0.b32.start.end [1/1] (short) (narrow) %v403_v31, 16 }
 0x104   : > { %v3928_v32 = vpop.f32.mrf.mxu0 }
 0x106   : > { %v413_v33 = vpop.f32.mrf.mxu0 }
 0x107   : > { %694 = vxpose.xlu1.b32.start.end [1/1] (short) (narrow) %v413_v33, 16 }
 0x108   : > { %726 = vxpose.xlu0.b32.start.end [1/1] (short) (narrow) %v3928_v32, 16  ;;  %v3931_v34 = vpop.f32.mrf.mxu0 }
 0x10a   : > { %v423_v35 = vpop.f32.mrf.mxu0 }
 0x10c   : > { %758 = vxpose.xlu1.b32.start.end [1/1] (short) (narrow) %v423_v35, 16  ;;  %v3934_v36 = vpop.f32.mrf.mxu0 }
 0x10d   : > { %790 = vxpose.xlu0.b32.start.end [1/1] (short) (narrow) %v3931_v34, 16 }
 0x10e   : > { %v433_v37 = vpop.f32.mrf.mxu0 }
 0x110   : > { %v3937_v38 = vpop.f32.mrf.mxu0 }
 0x111   : > { %822 = vxpose.xlu1.b32.start.end [1/1] (short) (narrow) %v433_v37, 16 }
 0x112   : > { %v443_v39 = vpop.f32.mrf.mxu0  ;;  %854 = vxpose.xlu0.b32.start.end [1/1] (short) (narrow) %v3934_v36, 16 }
 0x114   : > { %v3940_v40 = vpop.f32.mrf.mxu0 }
 0x116   : > { %886 = vxpose.xlu1.b32.start.end [1/1] (short) (narrow) %v443_v39, 16  ;;  %v453_v41 = vpop.f32.mrf.mxu0 }
 0x117   : > { %918 = vxpose.xlu0.b32.start.end [1/1] (short) (narrow) %v3937_v38, 16 }
 0x118   : > { %v3943_v42 = vpop.f32.mrf.mxu0 }
 0x11a   : > { %v463_v43 = vpop.f32.mrf.mxu0 }
 0x11b   : > { %950 = vxpose.xlu1.b32.start.end [1/1] (short) (narrow) %v453_v41, 16 }
 0x11c   : > { %v3946_v44 = vpop.f32.mrf.mxu0  ;;  %982 = vxpose.xlu0.b32.start.end [1/1] (short) (narrow) %v3940_v40, 16 }
 0x11e   : > { %v473_v45 = vpop.f32.mrf.mxu0 }
 0x120   : > { %1014 = vxpose.xlu1.b32.start.end [1/1] (short) (narrow) %v463_v43, 16  ;;  %v3949_v46 = vpop.f32.mrf.mxu0 }
 0x121   : > { %1046 = vxpose.xlu0.b32.start.end [1/1] (short) (narrow) %v3943_v42, 16 }
 0x122   : > { %v483_v47 = vpop.f32.mrf.mxu0 }
 0x124   : > { %v3952_v48 = vpop.f32.mrf.mxu0 }
 0x125   : > { %1078 = vxpose.xlu1.b32.start.end [1/1] (short) (narrow) %v473_v45, 16 }
 0x126   : > { %1110 = vxpose.xlu0.b32.start.end [1/1] (short) (narrow) %v3946_v44, 16  ;;  %v493_v49 = vpop.f32.mrf.mxu0 }
 0x12a   : > { %1142 = vxpose.xlu1.b32.start.end [1/1] (short) (narrow) %v483_v47, 16 }
 0x12b   : > { %1174 = vxpose.xlu0.b32.start.end [1/1] (short) (narrow) %v3949_v46, 16 }
 0x12f   : > { %502 = vxpose.xlu1.b32.start.end [1/1] (short) (narrow) %v383_v26, 16 }
 0x130   : > { %1206 = vxpose.xlu0.b32.start.end [1/1] (short) (narrow) %v493_v49, 16 }
 0x134   : > { %534 = vxpose.xlu1.b32.start.end [1/1] (short) (narrow) %v3919_v25, 16 }
 0x135   : > { %1238 = vxpose.xlu0.b32.start.end [1/1] (short) (narrow) %v3952_v48, 16 }
 0x139   : > { %566 = vxpose.xlu1.b32.start.end [1/1] (short) (narrow) %v393_v29, 16 }
 0x179   : > { %v614_v50 = vpop.trf.xlu0 }
 0x17a   : > { %3964 = vmatprep.mubr.msk.f32.mxu1 %vm244_vm0, %v614_v50 }
 0x17d   : > { %v615_v51 = vpop.trf.xlu0  ;;  %v678_v52 = vpop.trf.xlu1 }
 0x17e   : > { %3965 = vmatmul.mubr.msk.f32.vlgmr.msra.gmra.mxu1 %vm244_vm0, %v615_v51 }
 0x181   : > { %v679_v53 = vpop.trf.xlu1  ;;  %v646_v54 = vpop.trf.xlu0 }
 0x182   : > { %3967 = vmatprep.mubr.msk.f32.mxu1 %vm244_vm0, %v646_v54 }
 0x185   : > { %v647_v55 = vpop.trf.xlu0  ;;  %v710_v56 = vpop.trf.xlu1 }
 0x186   : > { %3968 = vmatmul.mubr.msk.f32.gmra.mxu1 %vm244_vm0, %v647_v55 }
 0x187   : > { %3970 = vmatprep.mubr.msk.f32.mxu1 %vm244_vm0, %v678_v52 }
 0x189   : > { %v711_v57 = vpop.trf.xlu1  ;;  %v742_v58 = vpop.trf.xlu0 }
 0x18a   : > { %3971 = vmatmul.mubr.msk.f32.gmra.mxu1 %vm244_vm0, %v679_v53 }
 0x18b   : > { %3973 = vmatprep.mubr.msk.f32.mxu1 %vm244_vm0, %v710_v56 }
 0x18d   : > { %v774_v59 = vpop.trf.xlu1  ;;  %v743_v60 = vpop.trf.xlu0 }
 0x18e   : > { %3974 = vmatmul.mubr.msk.f32.gmra.mxu1 %vm244_vm0, %v711_v57 }
 0x18f   : > { %3976 = vmatprep.mubr.msk.f32.mxu1 %vm244_vm0, %v742_v58 }
 0x191   : > { %v775_v61 = vpop.trf.xlu1  ;;  %v806_v62 = vpop.trf.xlu0 }
 0x192   : > { %3977 = vmatmul.mubr.msk.f32.gmra.mxu1 %vm244_vm0, %v743_v60 }
 0x193   : > { %3979 = vmatprep.mubr.msk.f32.mxu1 %vm244_vm0, %v774_v59 }
 0x195   : > { %v838_v63 = vpop.trf.xlu1  ;;  %v807_v0 = vpop.trf.xlu0 }
 0x196   : > { %3980 = vmatmul.mubr.msk.f32.gmra.mxu1 %vm244_vm0, %v775_v61 }
 0x197   : > { %3982 = vmatprep.mubr.msk.f32.mxu1 %vm244_vm0, %v806_v62 }
 0x199   : > { %v839_v1 = vpop.trf.xlu1  ;;  %v870_v2 = vpop.trf.xlu0 }
 0x19a   : > { %3983 = vmatmul.mubr.msk.f32.gmra.mxu1 %vm244_vm0, %v807_v0 }
 0x19b   : > { %3985 = vmatprep.mubr.msk.f32.mxu1 %vm244_vm0, %v838_v63 }
 0x19d   : > { %v902_v3 = vpop.trf.xlu1  ;;  %v871_v4 = vpop.trf.xlu0 }
 0x19e   : > { %3986 = vmatmul.mubr.msk.f32.gmra.mxu1 %vm244_vm0, %v839_v1 }
 0x19f   : > { %3988 = vmatprep.mubr.msk.f32.mxu1 %vm244_vm0, %v870_v2 }
 0x1a1   : > { %v903_v5 = vpop.trf.xlu1  ;;  %v934_v6 = vpop.trf.xlu0 }
 0x1a2   : > { %3989 = vmatmul.mubr.msk.f32.gmra.mxu1 %vm244_vm0, %v871_v4 }
 0x1a3   : > { %3991 = vmatprep.mubr.msk.f32.mxu1 %vm244_vm0, %v902_v3 }
 0x1a5   : > { %v966_v7 = vpop.trf.xlu1  ;;  %v935_v8 = vpop.trf.xlu0 }
 0x1a6   : > { %3992 = vmatmul.mubr.msk.f32.gmra.mxu1 %vm244_vm0, %v903_v5 }
 0x1a7   : > { %3994 = vmatprep.mubr.msk.f32.mxu1 %vm244_vm0, %v934_v6 }
 0x1a9   : > { %v967_v9 = vpop.trf.xlu1  ;;  %v998_v10 = vpop.trf.xlu0 }
 0x1aa   : > { %3995 = vmatmul.mubr.msk.f32.gmra.mxu1 %vm244_vm0, %v935_v8 }
 0x1ab   : > { %3997 = vmatprep.mubr.msk.f32.mxu1 %vm244_vm0, %v966_v7 }
 0x1ad   : > { %v1030_v11 = vpop.trf.xlu1  ;;  %v999_v12 = vpop.trf.xlu0 }
 0x1ae   : > { %3998 = vmatmul.mubr.msk.f32.gmra.mxu1 %vm244_vm0, %v967_v9 }
 0x1af   : > { %4000 = vmatprep.mubr.msk.f32.mxu1 %vm244_vm0, %v998_v10 }
 0x1b1   : > { %v1031_v13 = vpop.trf.xlu1  ;;  %v1062_v14 = vpop.trf.xlu0 }
 0x1b2   : > { %4001 = vmatmul.mubr.msk.f32.gmra.mxu1 %vm244_vm0, %v999_v12 }
 0x1b3   : > { %4003 = vmatprep.mubr.msk.f32.mxu1 %vm244_vm0, %v1030_v11 }
 0x1b5   : > { %v1094_v15 = vpop.trf.xlu1  ;;  %v1063_v16 = vpop.trf.xlu0 }
 0x1b6   : > { %4004 = vmatmul.mubr.msk.f32.gmra.mxu1 %vm244_vm0, %v1031_v13 }
 0x1b7   : > { %4006 = vmatprep.mubr.msk.f32.mxu1 %vm244_vm0, %v1062_v14 }
 0x1b9   : > { %v1095_v17 = vpop.trf.xlu1  ;;  %v1126_v18 = vpop.trf.xlu0 }
 0x1ba   : > { %4007 = vmatmul.mubr.msk.f32.gmra.mxu1 %vm244_vm0, %v1063_v16 }
 0x1bb   : > { %4009 = vmatprep.mubr.msk.f32.mxu1 %vm244_vm0, %v1094_v15 }
 0x1bd   : > { %v1158_v19 = vpop.trf.xlu1  ;;  %v1127_v20 = vpop.trf.xlu0 }
 0x1be   : > { %4010 = vmatmul.mubr.msk.f32.gmra.mxu1 %vm244_vm0, %v1095_v17 }
 0x1bf   : > { %4012 = vmatprep.mubr.msk.f32.mxu1 %vm244_vm0, %v1126_v18 }
 0x1c1   : > { %v1159_v21 = vpop.trf.xlu1  ;;  %v1190_v22 = vpop.trf.xlu0 }
 0x1c2   : > { %4013 = vmatmul.mubr.msk.f32.gmra.mxu1 %vm244_vm0, %v1127_v20 }
 0x1c3   : > { %4015 = vmatprep.mubr.msk.f32.mxu1 %vm244_vm0, %v1158_v19 }
 0x1c5   : > { %v518_v23 = vpop.trf.xlu1  ;;  %v1191_v24 = vpop.trf.xlu0 }
 0x1c6   : > { %3955 = vmatprep.mubr.msk.f32.mxu0 %vm244_vm0, %v518_v23  ;;  %4016 = vmatmul.mubr.msk.f32.gmra.mxu1 %vm244_vm0, %v1159_v21  ;;  %v4188_v21 = vmov 1983009808   ;;  %v2493_v23 = vlaneseq }
 0x1c7   : > { %4018 = vmatprep.mubr.msk.f32.mxu1 %vm244_vm0, %v1190_v22  ;;  %v2491_v22 = vunpack.c.l.s4 %v4188_v21 }
 0x1c9   : > { %v519_v25 = vpop.trf.xlu1  ;;  %v1222_v26 = vpop.trf.xlu0 }
 0x1ca   : > { %3956 = vmatmul.mubr.msk.f32.vlgmr.msra.gmra.mxu0 %vm244_vm0, %v519_v25  ;;  %4019 = vmatmul.mubr.msk.f32.gmra.mxu1 %vm244_vm0, %v1191_v24 }
 0x1cb   : > { %4021 = vmatprep.mubr.msk.f32.mxu1 %vm244_vm0, %v1222_v26  ;;  %v2492_v26 = vunpack.c.0.s8 %v2491_v22 }
 0x1cd   : > { %v550_v27 = vpop.trf.xlu1  ;;  %v1223_v28 = vpop.trf.xlu0 }
 0x1ce   : > { %3958 = vmatprep.mubr.msk.f32.mxu0 %vm244_vm0, %v550_v27  ;;  %4022 = vmatmul.mubr.msk.f32.gmra.mxu1 %vm244_vm0, %v1223_v28  ;;  %v2494_v27 = vshrl.u32 %v2493_v23, 7 }
 0x1d1   : > { %v551_v29 = vpop.trf.xlu1  ;;  %v1254_v30 = vpop.trf.xlu0 }
 0x1d2   : > { %3959 = vmatmul.mubr.msk.f32.gmra.mxu0 %vm244_vm0, %v551_v29  ;;  %4024 = vmatprep.mubr.msk.f32.mxu1 %vm244_vm0, %v1254_v30  ;;  %v4434_v29 = vsub.s32 %v2492_v26, %v2494_v27 }
 0x1d5   : > { %v582_v31 = vpop.trf.xlu1  ;;  %v1255_v32 = vpop.trf.xlu0 }
 0x1d6   : > { %3961 = vmatprep.mubr.msk.f32.mxu0 %vm244_vm0, %v582_v31  ;;  %4025 = vmatmul.mubr.msk.f32.gmra.mxu1 %vm244_vm0, %v1255_v32 }
 0x1d9   : > { %v583_v33 = vpop.trf.xlu1 }
 0x1da   : > { %3962 = vmatmul.mubr.msk.f32.gmra.mxu0 %vm244_vm0, %v583_v33 }
 0x23e   : > { %v3966_v34 = vpop.f32.mrf.mxu1 }
 0x240   : > { %v1511_v35 = vpop.f32.mrf.mxu1 }
 0x241   : > { %1816 = vxpose.xlu1.b32.start [1/2] (short) (narrow) %v1511_v35, 16 }
 0x245   : > { %1817 = vxpose.xlu1.b32.end [2/2] (short) (narrow) %v3966_v34, 16 }
 0x246   : > { %v3969_v36 = vpop.f32.mrf.mxu1 }
 0x248   : > { %v1521_v37 = vpop.f32.mrf.mxu1 }
 0x24a   : > { %v3972_v38 = vpop.f32.mrf.mxu1 }
 0x24c   : > { %v1531_v39 = vpop.f32.mrf.mxu1 }
 0x24e   : > { %v3975_v40 = vpop.f32.mrf.mxu1 }
 0x250   : > { %v1541_v41 = vpop.f32.mrf.mxu1 }
 0x252   : > { %v3978_v42 = vpop.f32.mrf.mxu1 }
 0x254   : > { %v1551_v43 = vpop.f32.mrf.mxu1 }
 0x256   : > { %v3981_v44 = vpop.f32.mrf.mxu1 }
 0x258   : > { %v1561_v45 = vpop.f32.mrf.mxu1 }
 0x25a   : > { %v3984_v46 = vpop.f32.mrf.mxu1 }
 0x25c   : > { %v1571_v47 = vpop.f32.mrf.mxu1 }
 0x25e   : > { %v3987_v48 = vpop.f32.mrf.mxu1 }
 0x260   : > { %v1581_v49 = vpop.f32.mrf.mxu1 }
 0x262   : > { %v3990_v50 = vpop.f32.mrf.mxu1 }
 0x264   : > { %v1591_v51 = vpop.f32.mrf.mxu1 }
 0x266   : > { %v3993_v52 = vpop.f32.mrf.mxu1 }
 0x268   : > { %v1601_v55 = vpop.f32.mrf.mxu1 }
 0x26a   : > { %v3996_v56 = vpop.f32.mrf.mxu1 }
 0x26c   : > { %v1611_v59 = vpop.f32.mrf.mxu1 }
 0x26e   : > { %v3999_v60 = vpop.f32.mrf.mxu1 }
 0x270   : > { %v1621_v63 = vpop.f32.mrf.mxu1 }
 0x272   : > { %v4002_v0 = vpop.f32.mrf.mxu1 }
 0x274   : > { %v1631_v1 = vpop.f32.mrf.mxu1 }
 0x276   : > { %v4005_v2 = vpop.f32.mrf.mxu1 }
 0x278   : > { %v1641_v3 = vpop.f32.mrf.mxu1 }
 0x27a   : > { %v4008_v4 = vpop.f32.mrf.mxu1 }
 0x27c   : > { %v1651_v5 = vpop.f32.mrf.mxu1 }
 0x27e   : > { %v4011_v6 = vpop.f32.mrf.mxu1 }
 0x280   : > { %v1661_v7 = vpop.f32.mrf.mxu1 }
 0x282   : > { %v4014_v8 = vpop.f32.mrf.mxu1 }
 0x284   : > { %v1671_v9 = vpop.f32.mrf.mxu1 }
 0x286   : > { %v4017_v10 = vpop.f32.mrf.mxu1 }
 0x288   : > { %v1681_v11 = vpop.f32.mrf.mxu1 }
 0x28a   : > { %v3957_v53 = vpop.f32.mrf.mxu0  ;;  %v4020_v12 = vpop.f32.mrf.mxu1 }
 0x28c   : > { %v1481_v54 = vpop.f32.mrf.mxu0  ;;  %v1691_v13 = vpop.f32.mrf.mxu1 }
 0x28d   : > { %1720 = vxpose.xlu0.b32.start [1/2] (short) (narrow) %v1481_v54, 16 }
 0x28e   : > { %v4023_v14 = vpop.f32.mrf.mxu1 }
 0x290   : > { %v1701_v15 = vpop.f32.mrf.mxu1 }
 0x291   : > { %1721 = vxpose.xlu0.b32.end [2/2] (short) (narrow) %v3957_v53, 16 }
 0x292   : > { %v3960_v57 = vpop.f32.mrf.mxu0 }
 0x294   : > { %v1491_v58 = vpop.f32.mrf.mxu0 }
 0x295   : > { %1752 = vxpose.xlu1.b32.start [1/2] (short) (narrow) %v1491_v58, 16 }
 0x296   : > { %v4026_v16 = vpop.f32.mrf.mxu1 }
 0x298   : > { %v1711_v17 = vpop.f32.mrf.mxu1 }
 0x299   : > { %1753 = vxpose.xlu1.b32.end [2/2] (short) (narrow) %v3960_v57, 16 }
 0x29a   : > { %v3963_v61 = vpop.f32.mrf.mxu0 }
 0x29c   : > { %v1501_v62 = vpop.f32.mrf.mxu0 }
 0x29d   : > { %1880 = vxpose.xlu1.b32.start [1/2] (short) (narrow) %v1531_v39, 16  ;;  %1784 = vxpose.xlu0.b32.start [1/2] (short) (narrow) %v1501_v62, 16 }
 0x2a1   : > { %1881 = vxpose.xlu1.b32.end [2/2] (short) (narrow) %v3972_v38, 16  ;;  %1785 = vxpose.xlu0.b32.end [2/2] (short) (narrow) %v3963_v61, 16 }
 0x2a5   : > { %1944 = vxpose.xlu1.b32.start [1/2] (short) (narrow) %v1551_v43, 16  ;;  %1848 = vxpose.xlu0.b32.start [1/2] (short) (narrow) %v1521_v37, 16 }
 0x2a9   : > { %1945 = vxpose.xlu1.b32.end [2/2] (short) (narrow) %v3978_v42, 16  ;;  %1849 = vxpose.xlu0.b32.end [2/2] (short) (narrow) %v3969_v36, 16 }
 0x2ad   : > { %2008 = vxpose.xlu1.b32.start [1/2] (short) (narrow) %v1571_v47, 16  ;;  %1912 = vxpose.xlu0.b32.start [1/2] (short) (narrow) %v1541_v41, 16  ;;  %v4189_v41 = vmov 1934713408  }
 0x2ae   : > { %v2555_v42 = vunpack.c.l.s4 %v4189_v41 }
 0x2b0   : > { %v2556_v47 = vunpack.c.0.s8 %v2555_v42 }
 0x2b1   : > { %2009 = vxpose.xlu1.b32.end [2/2] (short) (narrow) %v3984_v46, 16  ;;  %1913 = vxpose.xlu0.b32.end [2/2] (short) (narrow) %v3975_v40, 16 }
 0x2b5   : > { %2072 = vxpose.xlu1.b32.start [1/2] (short) (narrow) %v1591_v51, 16  ;;  %1976 = vxpose.xlu0.b32.start [1/2] (short) (narrow) %v1561_v45, 16 }
 0x2b9   : > { %2073 = vxpose.xlu1.b32.end [2/2] (short) (narrow) %v3990_v50, 16  ;;  %1977 = vxpose.xlu0.b32.end [2/2] (short) (narrow) %v3981_v44, 16 }
 0x2bd   : > { %2136 = vxpose.xlu1.b32.start [1/2] (short) (narrow) %v1611_v59, 16  ;;  %2040 = vxpose.xlu0.b32.start [1/2] (short) (narrow) %v1581_v49, 16  ;;  %v1832_v18 = vpop.trf.xlu1 }
 0x2c1   : > { %2137 = vxpose.xlu1.b32.end [2/2] (short) (narrow) %v3996_v56, 16  ;;  %2041 = vxpose.xlu0.b32.end [2/2] (short) (narrow) %v3987_v48, 16  ;;  %v4428_v19 = vpop.trf.xlu1  ;;  %v4456_v56 = vsub.s32 %v2556_v47, %v2494_v27 }
 0x2c5   : > { %2200 = vxpose.xlu1.b32.start [1/2] (short) (narrow) %v1631_v1, 16  ;;  %2104 = vxpose.xlu0.b32.start [1/2] (short) (narrow) %v1601_v55, 16 }
 0x2c9   : > { %2201 = vxpose.xlu1.b32.end [2/2] (short) (narrow) %v4002_v0, 16  ;;  %2105 = vxpose.xlu0.b32.end [2/2] (short) (narrow) %v3993_v52, 16 }
 0x2cd   : > { %2264 = vxpose.xlu1.b32.start [1/2] (short) (narrow) %v1651_v5, 16  ;;  %2168 = vxpose.xlu0.b32.start [1/2] (short) (narrow) %v1621_v63, 16 }
 0x2d1   : > { %2265 = vxpose.xlu1.b32.end [2/2] (short) (narrow) %v4008_v4, 16  ;;  %2169 = vxpose.xlu0.b32.end [2/2] (short) (narrow) %v3999_v60, 16 }
 0x2d5   : > { %2328 = vxpose.xlu1.b32.start [1/2] (short) (narrow) %v1671_v9, 16  ;;  %2232 = vxpose.xlu0.b32.start [1/2] (short) (narrow) %v1641_v3, 16 }
 0x2d9   : > { %2329 = vxpose.xlu1.b32.end [2/2] (short) (narrow) %v4014_v8, 16  ;;  %2233 = vxpose.xlu0.b32.end [2/2] (short) (narrow) %v4005_v2, 16 }
 0x2dd   : > { %2392 = vxpose.xlu1.b32.start [1/2] (short) (narrow) %v1691_v13, 16  ;;  %2296 = vxpose.xlu0.b32.start [1/2] (short) (narrow) %v1661_v7, 16 }
 0x2e1   : > { %2393 = vxpose.xlu1.b32.end [2/2] (short) (narrow) %v4020_v12, 16  ;;  %2297 = vxpose.xlu0.b32.end [2/2] (short) (narrow) %v4011_v6, 16 }
 0x2e5   : > { %2456 = vxpose.xlu1.b32.start [1/2] (short) (narrow) %v1711_v17, 16  ;;  %2360 = vxpose.xlu0.b32.start [1/2] (short) (narrow) %v1681_v11, 16 }
 0x2e9   : > { %2457 = vxpose.xlu1.b32.end [2/2] (short) (narrow) %v4026_v16, 16  ;;  %2361 = vxpose.xlu0.b32.end [2/2] (short) (narrow) %v4017_v10, 16 }
 0x2ed   : > { %2424 = vxpose.xlu0.b32.start [1/2] (short) (narrow) %v1701_v15, 16 }
 0x2f1   : > { %2425 = vxpose.xlu0.b32.end [2/2] (short) (narrow) %v4023_v14, 16 }
 0x309   : > { %v1736_v20 = vpop.trf.xlu0 }
 0x30d   : > { %v4430_v25 = vpop.trf.xlu0 }
 0x311   : > { %v1768_v24 = vpop.trf.xlu1 }
 0x312   : > { %v2505_v30 = vcombine.high %v1768_v24, %v1832_v18  ;;  %v2504_v44 = vcombine.low %v1768_v24, %v1832_v18 }
 0x314   : > { %v4437_v34 = vrot.slane %v2505_v30, %v4434_v29  ;;  %v2512_v51 = vrot.slane %v2504_v44, %v4434_v29 }
 0x315   : > { %v4432_v28 = vpop.trf.xlu1 }
 0x316   : > { %v2912_v0 = vcombine.low %v4432_v28, %v4428_v19 }
 0x319   : > { %v1896_v31 = vpop.trf.xlu1  ;;  %v1800_v32 = vpop.trf.xlu0 }
 0x31a   : > { %v2489_v33 = vcombine.high %v1736_v20, %v1800_v32  ;;  %v2488_v43 = vcombine.low %v1736_v20, %v1800_v32  ;;  %v2920_v20 = vrot.slane %v2912_v0, %v4434_v29 }
 0x31c   : > { %v4440_v35 = vrot.slane %v2489_v33, %v4434_v29  ;;  %v2496_v48 = vrot.slane %v2488_v43, %v4434_v29  ;;  %v2913_v43 = vcombine.high %v4432_v28, %v4428_v19 }
 0x31d   : > { %v4442_v36 = vpop.trf.xlu1  ;;  %v4444_v37 = vpop.trf.xlu0 }
 0x31e   : > { %v2569_v38 = vcombine.high %v4440_v35, %v4437_v34  ;;  %v2552_v57 = vcombine.low %v2496_v48, %v2512_v51  ;;  %v2568_v58 = vcombine.low %v4440_v35, %v4437_v34  ;;  %v2896_v59 = vcombine.low %v4430_v25, %v4444_v37 }
 0x31f   : > { %v2553_v8 = vcombine.high %v2496_v48, %v2512_v51 }
 0x320   : > { %v2576_v10 = vrot.slane %v2568_v58, %v4456_v56  ;;  %v2904_v11 = vrot.slane %v2896_v59, %v4434_v29  ;;  %v4477_v13 = vrot.slane %v2552_v57, %v4456_v56  ;;  %v4512_v44 = vrot.slane %v2569_v38, %v4456_v56 }
 0x321   : > { %v1960_v39 = vpop.trf.xlu1  ;;  %v1864_v40 = vpop.trf.xlu0  ;;  %v2567_v26 = vrot.slane %v2553_v8, %v4456_v56  ;;  %v2927_v58 = vrot.slane %v2913_v43, %v4434_v29 }
 0x322   : > { %v2536_v49 = vcombine.low %v1896_v31, %v1960_v39  ;;  %v2537_v50 = vcombine.high %v1896_v31, %v1960_v39  ;;  %v2960_v27 = vcombine.low %v2904_v11, %v2920_v20  ;;  %v2961_v47 = vcombine.high %v2904_v11, %v2920_v20 }
 0x324   : > { %v2544_v60 = vrot.slane %v2536_v49, %v4434_v29  ;;  %v2551_v61 = vrot.slane %v2537_v50, %v4434_v29  ;;  %v4517_v48 = vrot.slane %v2960_v27, %v4456_v56 }
 0x325   : > { %v4448_v45 = vpop.trf.xlu1  ;;  %v4450_v46 = vpop.trf.xlu0 }
 0x326   : > { %v2944_v1 = vcombine.low %v4442_v36, %v4448_v45  ;;  %v2945_v49 = vcombine.high %v4442_v36, %v4448_v45 }
 0x328   : > { %v2952_v15 = vrot.slane %v2944_v1, %v4434_v29 }
 0x329   : > { %v4454_v52 = vpop.trf.xlu1  ;;  %v1928_v53 = vpop.trf.xlu0 }
 0x32a   : > { %v2520_v54 = vcombine.low %v1864_v40, %v1928_v53  ;;  %v2521_v55 = vcombine.high %v1864_v40, %v1928_v53  ;;  %v2975_v53 = vrot.slane %v2961_v47, %v4456_v56 }
 0x32c   : > { %v2528_v62 = vrot.slane %v2520_v54, %v4434_v29  ;;  %v2535_v63 = vrot.slane %v2521_v55, %v4434_v29  ;;  %v2959_v54 = vrot.slane %v2945_v49, %v4434_v29 }
 0x32d   : > { %v4470_v2 = vpop.trf.xlu1  ;;  %v1929_v3 = vpop.trf.xlu0 }
 0x32e   : > { %v2584_v4 = vcombine.low %v2528_v62, %v2544_v60  ;;  %v2585_v5 = vcombine.high %v2528_v62, %v2544_v60  ;;  %v2600_v6 = vcombine.low %v2535_v63, %v2551_v61  ;;  %v2601_v7 = vcombine.high %v2535_v63, %v2551_v61 }
 0x32f   : > { %v2928_v9 = vcombine.low %v4450_v46, %v1929_v3  ;;  %v2929_v31 = vcombine.high %v4450_v46, %v1929_v3  ;;  %v2897_v46 = vcombine.high %v4430_v25, %v4444_v37 }
 0x330   : > { %v2608_v12 = vrot.slane %v2600_v6, %v4456_v56  ;;  %v4480_v14 = vrot.slane %v2584_v4, %v4456_v56  ;;  %v2599_v21 = vrot.slane %v2585_v5, %v4456_v56  ;;  %v4496_v30 = vrot.slane %v2601_v7, %v4456_v56 }
 0x331   : > { %v2936_v16 = vrot.slane %v2928_v9, %v4434_v29  ;;  %v4484_v17 = vpop.trf.xlu1  ;;  %v4486_v18 = vpop.trf.xlu0  ;;  %v2943_v19 = vrot.slane %v2929_v31, %v4434_v29  ;;  %v2911_v51 = vrot.slane %v2897_v46, %v4434_v29 }
 0x332   : > { %v2620_v22 = vcombine.low %v2576_v10, %v2608_v12  ;;  %v2617_v23 = vcombine.high %v4477_v13, %v4480_v14  ;;  %v2621_v41 = vcombine.high %v2576_v10, %v2608_v12  ;;  %v2618_v42 = vcombine.low %v2567_v26, %v2599_v21 }
 0x333   : > { %v2992_v24 = vcombine.low %v2936_v16, %v2952_v15  ;;  %v2993_v32 = vcombine.high %v2936_v16, %v2952_v15  ;;  %v2622_v25 = vcombine.low %v4512_v44, %v4496_v30  ;;  %v2623_v37 = vcombine.high %v4512_v44, %v4496_v30 }
 0x334   : > { %3343 = vrot.lane.b32.xlu1 %v2620_v22, %s4190_s11  ;;  %3307 = vrot.lane.b32.xlu0 %v2617_v23, %s4191_s22  ;;  %v2619_v38 = vcombine.high %v2567_v26, %v2599_v21  ;;  %v2616_v45 = vcombine.low %v4477_v13, %v4480_v14  ;;  %v3008_v59 = vcombine.low %v2943_v19, %v2959_v54 }
 0x335   : > { %v4499_v33 = vpop.trf.xlu1  ;;  %v4501_v39 = vpop.trf.xlu0  ;;  %v4504_v40 = vrot.slane %v2992_v24, %v4456_v56  ;;  %v3007_v28 = vrot.slane %v2993_v32, %v4456_v56  ;;  %v2976_v61 = vcombine.low %v2911_v51, %v2927_v58  ;;  %v2640_v6 = vcombine.low %v4454_v52, %v4484_v17 }
 0x336   : > { %v3016_v0 = vrot.slane %v3008_v59, %v4456_v56  ;;  %v2641_v7 = vcombine.high %v4454_v52, %v4484_v17  ;;  %v3009_v10 = vcombine.high %v2943_v19, %v2959_v54  ;;  %v2977_v12 = vcombine.high %v2911_v51, %v2927_v58 }
 0x337   : > { %v3025_v36 = vcombine.high %v4517_v48, %v4504_v40  ;;  %v3024_v50 = vcombine.low %v4517_v48, %v4504_v40  ;;  %v3026_v60 = vcombine.low %v2975_v53, %v3007_v28  ;;  %v3027_v1 = vcombine.high %v2975_v53, %v3007_v28 }
 0x338   : > { %3355 = vrot.lane.b32.xlu1 %v2621_v41, %s4192_s23  ;;  %3319 = vrot.lane.b32.xlu0 %v2618_v42, %s4193_s28  ;;  %v2984_v5 = vrot.slane %v2976_v61, %v4456_v56  ;;  %v2648_v21 = vrot.slane %v2640_v6, %v4434_v29  ;;  %v4564_v22 = vrot.slane %v2641_v7, %v4434_v29 }
 0x339   : > { %v2152_v34 = vpop.trf.xlu1  ;;  %v2056_v35 = vpop.trf.xlu0  ;;  %v4569_v23 = vrot.slane %v3009_v10, %v4456_v56  ;;  %v4572_v31 = vrot.slane %v2977_v12, %v4456_v56  ;;  %v3048_v19 = vcombine.low %v4470_v2, %v4499_v33 }
 0x33a   : > { %v2624_v3 = vcombine.low %v4486_v18, %v2056_v35  ;;  %v2625_v4 = vcombine.high %v4486_v18, %v2056_v35  ;;  %v3028_v11 = vcombine.low %v2984_v5, %v3016_v0  ;;  %v3029_v27 = vcombine.high %v2984_v5, %v3016_v0 }
 0x33b   : > { %v3030_v53 = vcombine.low %v4572_v31, %v4569_v23 }
 0x33c   : > { %3331 = vrot.lane.b32.xlu0 %v2619_v38, %s4194_s29  ;;  %3391 = vrot.lane.b32.xlu1 %v3025_v36, %s4191_s22  ;;  %v2632_v15 = vrot.slane %v2624_v3, %v4434_v29  ;;  %v4559_v16 = vrot.slane %v2625_v4, %v4434_v29 }
 0x33d   : > { %v4540_v55 = vpop.trf.xlu1  ;;  %v4542_v57 = vpop.trf.xlu0 }
 0x33e   : > { %v2688_v32 = vcombine.low %v2632_v15, %v2648_v21  ;;  %v2705_v41 = vcombine.high %v4559_v16, %v4564_v22  ;;  %v3032_v42 = vcombine.low %v4501_v39, %v4542_v57  ;;  %v2689_v54 = vcombine.high %v2632_v15, %v2648_v21 }
 0x340   : > { %3403 = vrot.lane.b32.xlu1 %v3026_v60, %s4193_s28  ;;  %v4592_v58 = vrot.slane %v2688_v32, %v4456_v56  ;;  %v2719_v61 = vrot.slane %v2705_v41, %v4456_v56  ;;  %v2703_v15 = vrot.slane %v2689_v54, %v4456_v56 }
 0x341   : > { %v2216_v62 = vpop.trf.xlu1  ;;  %v2120_v63 = vpop.trf.xlu0 }
 0x342   : > { %v2672_v18 = vcombine.low %v2152_v34, %v2216_v62  ;;  %v2673_v20 = vcombine.high %v2152_v34, %v2216_v62  ;;  %v3040_v62 = vrot.slane %v3032_v42, %v4434_v29 }
 0x344   : > { %3415 = vrot.lane.b32.xlu1 %v3027_v1, %s4194_s29  ;;  %v2680_v43 = vrot.slane %v2672_v18, %v4434_v29  ;;  %v2687_v46 = vrot.slane %v2673_v20, %v4434_v29  ;;  %v3033_v1 = vcombine.high %v4501_v39, %v4542_v57  ;;  %v3049_v39 = vcombine.high %v4470_v2, %v4499_v33 }
 0x345   : > { %v4555_v8 = vpop.trf.xlu1  ;;  %v2121_v9 = vpop.trf.xlu0 }
 0x346   : > { %v3080_v28 = vcombine.low %v4540_v55, %v4555_v8  ;;  %v3081_v3 = vcombine.high %v4540_v55, %v4555_v8  ;;  %v3047_v21 = vrot.slane %v3033_v1, %v4434_v29  ;;  %v3063_v42 = vrot.slane %v3049_v39, %v4434_v29 }
 0x348   : > { %3427 = vrot.lane.b32.xlu1 %v3028_v11, %s4190_s11  ;;  %v3088_v4 = vrot.slane %v3080_v28, %v4434_v29 }
 0x349   : > { %v4566_v52 = vpop.trf.xlu1  ;;  %v2184_v17 = vpop.trf.xlu0 }
 0x34a   : > { %v2656_v24 = vcombine.low %v2120_v63, %v2184_v17  ;;  %v2657_v26 = vcombine.high %v2120_v63, %v2184_v17  ;;  %v3095_v17 = vrot.slane %v3081_v3, %v4434_v29  ;;  %v3113_v3 = vcombine.high %v3047_v21, %v3063_v42 }
 0x34c   : > { %v2664_v47 = vrot.slane %v2656_v24, %v4434_v29  ;;  %v2671_v49 = vrot.slane %v2657_v26, %v4434_v29  ;;  %3439 = vrot.lane.b32.xlu1 %v3029_v27, %s4192_s23  ;;  %v3127_v39 = vrot.slane %v3113_v3, %v4456_v56 }
 0x34d   : > { %v4587_v34 = vpop.trf.xlu1  ;;  %v2185_v35 = vpop.trf.xlu0 }
 0x34e   : > { %v2720_v38 = vcombine.low %v2664_v47, %v2680_v43  ;;  %v2721_v36 = vcombine.high %v2664_v47, %v2680_v43  ;;  %v2737_v51 = vcombine.high %v2671_v49, %v2687_v46  ;;  %v3064_v59 = vcombine.low %v2121_v9, %v2185_v35 }
 0x34f   : > { %v3065_v60 = vcombine.high %v2121_v9, %v2185_v35  ;;  %v3056_v9 = vrot.slane %v3048_v19, %v4434_v29  ;;  %v2736_v24 = vcombine.low %v2671_v49, %v2687_v46  ;;  %v2704_v47 = vcombine.low %v4559_v16, %v4564_v22 }
 0x350   : > { %v4597_v63 = vrot.slane %v2720_v38, %v4456_v56  ;;  %v2751_v0 = vrot.slane %v2737_v51, %v4456_v56  ;;  %3451 = vrot.lane.b32.xlu1 %v3030_v53, %s4195_s30  ;;  %v3072_v5 = vrot.slane %v3064_v59, %v4434_v29  ;;  %v2735_v10 = vrot.slane %v2721_v36, %v4456_v56 }
 0x351   : > { %v4607_v6 = vpop.trf.xlu1  ;;  %v4609_v7 = vpop.trf.xlu0  ;;  %v3079_v55 = vrot.slane %v3065_v60, %v4434_v29  ;;  %v3096_v18 = vcombine.low %v3040_v62, %v3056_v9  ;;  %v3097_v20 = vcombine.high %v3040_v62, %v3056_v9  ;;  %v3112_v19 = vcombine.low %v3047_v21, %v3063_v42 }
 0x352   : > { %v2758_v11 = vcombine.low %v2719_v61, %v2751_v0  ;;  %v2753_v12 = vcombine.high %v4592_v58, %v4597_v63  ;;  %v3128_v57 = vcombine.low %v3072_v5, %v3088_v4  ;;  %v3129_v8 = vcombine.high %v3072_v5, %v3088_v4 }
 0x353   : > { %v2759_v32 = vcombine.high %v2719_v61, %v2751_v0  ;;  %v2754_v41 = vcombine.low %v2703_v15, %v2735_v10  ;;  %v3144_v43 = vcombine.low %v3079_v55, %v3095_v17  ;;  %v4637_v46 = vrot.slane %v3096_v18, %v4456_v56 }
 0x354   : > { %3369 = vrot.lane.b32.xlu0 %v2758_v11, %s4195_s30  ;;  %3309 = vrot.lane.b32.xlu1 %v2753_v12, %s4191_s22  ;;  %v4628_v33 = vrot.slane %v3128_v57, %v4456_v56  ;;  %v4631_v27 = vrot.slane %v3129_v8, %v4456_v56  ;;  %v3111_v49 = vrot.slane %v3097_v20, %v4456_v56 }
 0x355   : > { %v4623_v26 = vpop.trf.xlu1  ;;  %v4625_v2 = vpop.trf.xlu0  ;;  %v2744_v28 = vrot.slane %v2736_v24, %v4456_v56  ;;  %v2755_v36 = vcombine.high %v2703_v15, %v2735_v10  ;;  %v2752_v16 = vcombine.low %v4592_v58, %v4597_v63  ;;  %v3152_v53 = vrot.slane %v3144_v43, %v4456_v56 }
 0x356   : > { %v3163_v51 = vcombine.high %v3111_v49, %v4631_v27  ;;  %v3160_v22 = vcombine.low %v4637_v46, %v4628_v33  ;;  %v2712_v54 = vrot.slane %v2704_v47, %v4456_v56  ;;  %v3120_v59 = vrot.slane %v3112_v19, %v4456_v56 }
 0x357   : > { %v3145_v0 = vcombine.high %v3079_v55, %v3095_v17  ;;  %v2776_v55 = vcombine.low %v4566_v52, %v4607_v6  ;;  %v2777_v15 = vcombine.high %v4566_v52, %v4607_v6  ;;  %v3161_v18 = vcombine.high %v4637_v46, %v4628_v33 }
 0x358   : > { %3381 = vrot.lane.b32.xlu0 %v2759_v32, %s4196_s5  ;;  %3321 = vrot.lane.b32.xlu1 %v2754_v41, %s4193_s28  ;;  %v2756_v62 = vcombine.low %v2712_v54, %v2744_v28  ;;  %v3164_v1 = vcombine.low %v3120_v59, %v3152_v53  ;;  %v2757_v5 = vcombine.high %v2712_v54, %v2744_v28 }
 0x359   : > { %v2408_v35 = vpop.trf.xlu1  ;;  %v2312_v38 = vpop.trf.xlu0  ;;  %v3159_v9 = vrot.slane %v3145_v0, %v4456_v56  ;;  %v3165_v11 = vcombine.high %v3120_v59, %v3152_v53  ;;  %v2784_v32 = vrot.slane %v2776_v55, %v4434_v29  ;;  %v4679_v52 = vrot.slane %v2777_v15, %v4434_v29 }
 0x35a   : > { %v2760_v10 = vcombine.low %v4609_v7, %v2312_v38  ;;  %v2761_v57 = vcombine.high %v4609_v7, %v2312_v38  ;;  %v3162_v47 = vcombine.low %v3111_v49, %v4631_v27  ;;  %v3184_v59 = vcombine.low %v4587_v34, %v4623_v26 }
 0x35b   : > { %v3166_v21 = vcombine.low %v3127_v39, %v3159_v9  ;;  %v3167_v38 = vcombine.high %v3127_v39, %v3159_v9  ;;  %v3185_v27 = vcombine.high %v4587_v34, %v4623_v26 }
 0x35c   : > { %3333 = vrot.lane.b32.xlu1 %v2755_v36, %s4194_s29  ;;  %3417 = vrot.lane.b32.xlu0 %v3163_v51, %s4194_s29  ;;  %v2768_v20 = vrot.slane %v2760_v10, %v4434_v29  ;;  %v4675_v7 = vrot.slane %v2761_v57, %v4434_v29 }
 0x35d   : > { %v4653_v60 = vpop.trf.xlu0  ;;  %v4655_v61 = vpop.trf.xlu1 }
 0x35e   : > { %v2824_v19 = vcombine.low %v2768_v20, %v2784_v32  ;;  %v2825_v28 = vcombine.high %v2768_v20, %v2784_v32  ;;  %v2840_v49 = vcombine.low %v4675_v7, %v4679_v52 }
 0x360   : > { %3345 = vrot.lane.b32.xlu1 %v2756_v62, %s4190_s11  ;;  %3429 = vrot.lane.b32.xlu0 %v3164_v1, %s4190_s11  ;;  %v3169_v1 = vcombine.high %v4625_v2, %v4653_v60  ;;  %v4700_v9 = vrot.slane %v2824_v19, %v4456_v56 }
 0x361   : > { %v2376_v4 = vpop.trf.xlu0  ;;  %v2472_v12 = vpop.trf.xlu1 }
 0x362   : > { %v2808_v17 = vcombine.low %v2408_v35, %v2472_v12  ;;  %v2809_v24 = vcombine.high %v2408_v35, %v2472_v12  ;;  %v3168_v35 = vcombine.low %v4625_v2, %v4653_v60  ;;  %v3192_v2 = vrot.slane %v3184_v59, %v4434_v29 }
 0x363   : > { %v3183_v32 = vrot.slane %v3169_v1, %v4434_v29  ;;  %v2841_v59 = vcombine.high %v4675_v7, %v4679_v52 }
 0x364   : > { %3357 = vrot.lane.b32.xlu1 %v2757_v5, %s4192_s23  ;;  %3441 = vrot.lane.b32.xlu0 %v3165_v11, %s4192_s23  ;;  %v2816_v36 = vrot.slane %v2808_v17, %v4434_v29  ;;  %v2823_v51 = vrot.slane %v2809_v24, %v4434_v29  ;;  %v3176_v10 = vrot.slane %v3168_v35, %v4434_v29 }
 0x365   : > { %v2377_v8 = vpop.trf.xlu0  ;;  %v2473_v6 = vpop.trf.xlu1  ;;  %v2839_v11 = vrot.slane %v2825_v28, %v4456_v56 }
 0x366   : > { %v3216_v62 = vcombine.low %v4655_v61, %v2473_v6  ;;  %v3217_v12 = vcombine.high %v4655_v61, %v2473_v6  ;;  %v2848_v61 = vrot.slane %v2840_v49, %v4456_v56 }
 0x368   : > { %3393 = vrot.lane.b32.xlu1 %v3161_v18, %s4191_s22  ;;  %3453 = vrot.lane.b32.xlu0 %v3166_v21, %s4195_s30  ;;  %v3224_v60 = vrot.slane %v3216_v62, %v4434_v29  ;;  %v3232_v21 = vcombine.low %v3176_v10, %v3192_v2  ;;  %v3231_v6 = vrot.slane %v3217_v12, %v4434_v29 }
 0x369   : > { %v2440_v41 = vpop.trf.xlu0 }
 0x36a   : > { %v2792_v42 = vcombine.low %v2376_v4, %v2440_v41  ;;  %v2793_v43 = vcombine.high %v2376_v4, %v2440_v41  ;;  %v3233_v41 = vcombine.high %v3176_v10, %v3192_v2 }
 0x36c   : > { %v2800_v53 = vrot.slane %v2792_v42, %v4434_v29  ;;  %v2807_v54 = vrot.slane %v2793_v43, %v4434_v29  ;;  %3405 = vrot.lane.b32.xlu1 %v3162_v47, %s4193_s28  ;;  %3465 = vrot.lane.b32.xlu0 %v3167_v38, %s4196_s5  ;;  %v3199_v42 = vrot.slane %v3185_v27, %v4434_v29 }
 0x36d   : > { %v2441_v0 = vpop.trf.xlu0 }
 0x36e   : > { %v2856_v3 = vcombine.low %v2800_v53, %v2816_v36  ;;  %v2857_v4 = vcombine.high %v2800_v53, %v2816_v36  ;;  %v2872_v5 = vcombine.low %v2807_v54, %v2823_v51  ;;  %v3200_v34 = vcombine.low %v2377_v8, %v2441_v0 }
 0x36f   : > { %v3201_v26 = vcombine.high %v2377_v8, %v2441_v0  ;;  %v2873_v43 = vcombine.high %v2807_v54, %v2823_v51  ;;  %v4729_v53 = vrot.slane %v3232_v21, %v4456_v56  ;;  %v3248_v51 = vcombine.low %v3183_v32, %v3199_v42 }
 0x370   : > { %v4706_v39 = vrot.slane %v2856_v3, %v4456_v56  ;;  %v2871_v55 = vrot.slane %v2857_v4, %v4456_v56  ;;  %v2880_v57 = vrot.slane %v2872_v5, %v4456_v56  ;;  %v3208_v15 = vrot.slane %v3200_v34, %v4434_v29 }
 0x371   : > { %v3215_v18 = vrot.slane %v3201_v26, %v4434_v29  ;;  %v3247_v29 = vrot.slane %v3233_v41, %v4456_v56  ;;  %v2887_v54 = vrot.slane %v2873_v43, %v4456_v56  ;;  %v2855_v3 = vrot.slane %v2841_v59, %v4456_v56 }
 0x372   : > { %v2891_v8 = vcombine.high %v2839_v11, %v2871_v55  ;;  %v2889_v20 = vcombine.high %v4700_v9, %v4706_v39  ;;  %v3264_v17 = vcombine.low %v3208_v15, %v3224_v60  ;;  %v3265_v24 = vcombine.high %v3208_v15, %v3224_v60 }
 0x373   : > { %v2892_v19 = vcombine.low %v2848_v61, %v2880_v57  ;;  %v3280_v35 = vcombine.low %v3215_v18, %v3231_v6  ;;  %v2890_v38 = vcombine.low %v2839_v11, %v2871_v55  ;;  %v2888_v36 = vcombine.low %v4700_v9, %v4706_v39 }
 0x374   : > { %3335 = vrot.lane.b32.xlu0 %v2891_v8, %s4194_s29  ;;  %3311 = vrot.lane.b32.xlu1 %v2889_v20, %s4191_s22  ;;  %v4723_v47 = vrot.slane %v3264_v17, %v4456_v56  ;;  %v3279_v28 = vrot.slane %v3265_v24, %v4456_v56  ;;  %v3281_v49 = vcombine.high %v3215_v18, %v3231_v6  ;;  %v4197_v60 = vmov 0.0  }
 0x375   : > { %v3288_v62 = vrot.slane %v3280_v35, %v4456_v56  ;;  %v2893_v0 = vcombine.high %v2848_v61, %v2880_v57  ;;  %v3249_v7 = vcombine.high %v3183_v32, %v3199_v42  ;;  %v3256_v52 = vrot.slane %v3248_v51, %v4456_v56  ;;  %3610 = vmatprep.mubr.f32.mxu0 %v4197_v60 }
 0x376   : > { %v3296_v27 = vcombine.low %v4729_v53, %v4723_v47  ;;  %v3298_v1 = vcombine.low %v3247_v29, %v3279_v28  ;;  %v3295_v4 = vrot.slane %v3281_v49, %v4456_v56  ;;  %v2894_v5 = vcombine.low %v2855_v3, %v2887_v54 }
 0x377   : > { %v3301_v10 = vcombine.high %v3256_v52, %v3288_v62  ;;  %v3263_v34 = vrot.slane %v3249_v7, %v4456_v56  ;;  %v2895_v26 = vcombine.high %v2855_v3, %v2887_v54  ;;  %v3297_v55 = vcombine.high %v4729_v53, %v4723_v47 }
 0x378   : > { %3347 = vrot.lane.b32.xlu0 %v2892_v19, %s4190_s11  ;;  %3323 = vrot.lane.b32.xlu1 %v2890_v38, %s4193_s28  ;;  %v3031_v56 = vcombine.high %v4572_v31, %v4569_v23  ;;  %v3299_v2 = vcombine.high %v3247_v29, %v3279_v28  ;;  %v3300_v57 = vcombine.low %v3256_v52, %v3288_v62 }
 0x379   : > { %v3302_v11 = vcombine.low %v3263_v34, %v3295_v4  ;;  %v3303_v12 = vcombine.high %v3263_v34, %v3295_v4 }
 0x37c   : > { %3359 = vrot.lane.b32.xlu0 %v2893_v0, %s4192_s23  ;;  %3407 = vrot.lane.b32.xlu1 %v3298_v1, %s4193_s28 }
 0x380   : > { %3371 = vrot.lane.b32.xlu0 %v2894_v5, %s4195_s30  ;;  %3443 = vrot.lane.b32.xlu1 %v3301_v10, %s4192_s23 }
 0x384   : > { %3383 = vrot.lane.b32.xlu0 %v2895_v26, %s4196_s5  ;;  %3455 = vrot.lane.b32.xlu1 %v3302_v11, %s4195_s30 }
 0x388   : > { %3467 = vrot.lane.b32.xlu1 %v3303_v12, %s4196_s5  ;;  %3395 = vrot.lane.b32.xlu0 %v3297_v55, %s4191_s22 }
 0x38c   : > { %3463 = vrot.lane.b32.xlu1 %v3031_v56, %s4196_s5  ;;  %3419 = vrot.lane.b32.xlu0 %v3299_v2, %s4194_s29  ;;  %s4031_s29 = smul.u32 96, %s4316_s12 }
 0x390   : > { %3431 = vrot.lane.b32.xlu0 %v3300_v57, %s4190_s11 }
 0x394   : > { %3367 = vrot.lane.b32.xlu0 %v2622_v25, %s4195_s30  ;;  %s216_s30 = scalar_lea.vmem [#allocation5], %s4031_s29 }
 0x395   : > { %s3674_s6 = sshll.u32 %s216_s30, 4  ;;  %s4876_s6 = int_to_ptr.vmem [resolvable:$true] %s3674_s6 }
 0x396   : > { %s4119_s7 = scalar_lea.vmem %s4876_s6, 1536 }
 0x397   : > { %p4120_p11 = scmp.ne.s32.totalorder %s4876_s6, %s4119_s7 }
 0x398   : > { %3379 = vrot.lane.b32.xlu0 %v2623_v37, %s4196_s5  ;;  %s3840_s5 = smul.u32 1536, %s4246_s19  ;;  %s4198_s19 = smov [#allocation5]  }
 0x399   : > { %p4121_p13 = pnand %p4120_p11, %p4932_p12  ;;  %s4123_s8 = sshll.u32 %s4198_s19, 4  ;;  %s4124_s8 = int_to_ptr.vmem [resolvable:$false] %s4123_s8 }
 0x39a   : > { %s4874_s14 = scalar_lea.hbm %s4924_s4, %s3840_s5  ;;  %s4125_s25 = scalar_lea.vmem %s4124_s8, 3072 }
 0x39b   : > { %p4122_p4 = pneg %p4121_p13  ;;  %p4126_p5 = scmp.lt.s32.totalorder %s4876_s6, %s4124_s8 }
 0x39c   : > { %p4127_p7 = scmp.lt.s32.totalorder %s4125_s25, %s4119_s7 }
 0x39e   : > { %p4128_p8 = por %p4127_p7, %p4126_p5 }
 0x3a0   : > { %p4129_p10 = pnand %p4128_p8, %p4122_p4 }
 0x3a6   : > { %v3344_v23 = vpop.permute.xlu1 %3343  ;;  %v3308_v31 = vpop.permute.xlu0 %3307 }
 0x3a7   : > { %v3473_v15 = vsel %vm3472_vm1, %v2616_v45, %v3308_v31 }
 0x3aa   : > { %v3356_v18 = vpop.permute.xlu1 %3355  ;;  %v3320_v8 = vpop.permute.xlu0 %3319 }
 0x3ab   : > { %v3477_v20 = vsel %vm3476_vm2, %v3473_v15, %v3320_v8 }
 0x3ae   : > { %v3392_v25 = vpop.permute.xlu1 %3391  ;;  %v3332_v61 = vpop.permute.xlu0 %3331 }
 0x3af   : > { %v3500_v30 = vsel %vm3472_vm1, %v3024_v50, %v3392_v25  ;;  %v3481_v44 = vsel %vm3480_vm3, %v3477_v20, %v3332_v61 }
 0x3b0   : > { %v3485_v13 = vsel %vm3484_vm4, %v3481_v44, %v3344_v23 }
 0x3b1   : > { %v4780_v14 = vsel %vm3488_vm5, %v3485_v13, %v3356_v18 }
 0x3b2   : > { %v3404_v37 = vpop.permute.xlu1 %3403 }
 0x3b3   : > { %v3503_v45 = vsel %vm3476_vm2, %v3500_v30, %v3404_v37 }
 0x3b6   : > { %v3416_v21 = vpop.permute.xlu1 %3415 }
 0x3b7   : > { %v3506_v17 = vsel %vm3480_vm3, %v3503_v45, %v3416_v21 }
 0x3ba   : > { %v3428_v24 = vpop.permute.xlu1 %3427 }
 0x3bb   : > { %v3509_v13 = vsel %vm3484_vm4, %v3506_v17, %v3428_v24 }
 0x3be   : > { %v4784_v32 = vpop.permute.xlu1 %3439 }
 0x3bf   : > { %v3512_v21 = vsel %vm3488_vm5, %v3509_v13, %v4784_v32  ;;  %v3521_v32 = vld [vmem:[%s4923_s3] sm:$0xff] }
 0x3c2   : > { %v4786_v41 = vpop.permute.xlu1 %3451 }
 0x3c6   : > { %v3310_v40 = vpop.permute.xlu1 %3309  ;;  %v3370_v48 = vpop.permute.xlu0 %3369 }
 0x3ca   : > { %v3322_v50 = vpop.permute.xlu1 %3321  ;;  %v4788_v6 = vpop.permute.xlu0 %3381 }
 0x3ce   : > { %v3334_v42 = vpop.permute.xlu1 %3333  ;;  %v3418_v43 = vpop.permute.xlu0 %3417 }
 0x3d2   : > { %v3346_v19 = vpop.permute.xlu1 %3345  ;;  %v3430_v28 = vpop.permute.xlu0 %3429 }
 0x3d6   : > { %v3358_v35 = vpop.permute.xlu1 %3357  ;;  %v3442_v38 = vpop.permute.xlu0 %3441 }
 0x3da   : > { %v3394_v59 = vpop.permute.xlu1 %3393  ;;  %v3454_v29 = vpop.permute.xlu0 %3453 }
 0x3db   : > { %v3501_v10 = vsel %vm3472_vm1, %v3160_v22, %v3394_v59  ;;  %v3474_v22 = vsel %vm3472_vm1, %v2752_v16, %v3310_v40 }
 0x3de   : > { %v3406_v51 = vpop.permute.xlu1 %3405  ;;  %v3466_v54 = vpop.permute.xlu0 %3465 }
 0x3df   : > { %v3504_v34 = vsel %vm3476_vm2, %v3501_v10, %v3406_v51 }
 0x3e0   : > { %v3507_v55 = vsel %vm3480_vm3, %v3504_v34, %v3418_v43 }
 0x3e1   : > { %v3510_v9 = vsel %vm3484_vm4, %v3507_v55, %v3430_v28  ;;  %v3526_v28 = vld [vmem:[%s4923_s3 + $0x28] sm:$0xff] }
 0x3e2   : > { %v3513_v63 = vsel %vm3488_vm5, %v3510_v9, %v3442_v38 }
 0x3e3   : > { %v3516_v20 = vsel %vm3492_vm6, %v3513_v63, %v3454_v29 }
 0x3e4   : > { %v3519_v40 = vsel %vm3496_vm7, %v3516_v20, %v3466_v54 }
 0x3e6   : > { %v3312_v49 = vpop.permute.xlu1 %3311  ;;  %v3336_v62 = vpop.permute.xlu0 %3335 }
 0x3e7   : > { %v3475_v11 = vsel %vm3472_vm1, %v2888_v36, %v3312_v49  ;;  %v3478_v36 = vsel %vm3476_vm2, %v3474_v22, %v3322_v50 }
 0x3e8   : > { %v3482_v2 = vsel %vm3480_vm3, %v3478_v36, %v3334_v42 }
 0x3e9   : > { %v3486_v47 = vsel %vm3484_vm4, %v3482_v2, %v3346_v19  ;;  %v3525_v19 = vld [vmem:[%s4923_s3 + $0x20] sm:$0xff] }
 0x3ea   : > { %v3324_v0 = vpop.permute.xlu1 %3323  ;;  %v3348_v1 = vpop.permute.xlu0 %3347  ;;  %v3490_v16 = vsel %vm3488_vm5, %v3486_v47, %v3358_v35 }
 0x3eb   : > { %v3479_v56 = vsel %vm3476_vm2, %v3475_v11, %v3324_v0  ;;  %v3494_v25 = vsel %vm3492_vm6, %v3490_v16, %v3370_v48  ;;  %v3515_v48 = vsel %vm3492_vm6, %v3512_v21, %v4786_v41  ;;  %v3523_v41 = vld [vmem:[%s4923_s3 + $0x10] sm:$0xff] }
 0x3ec   : > { %v3483_v39 = vsel %vm3480_vm3, %v3479_v56, %v3336_v62  ;;  %v3498_v50 = vsel %vm3496_vm7, %v3494_v25, %v4788_v6  ;;  %v3524_v6 = vld [vmem:[%s4923_s3 + $0x18] sm:$0xff] }
 0x3ed   : > { %v3487_v53 = vsel %vm3484_vm4, %v3483_v39, %v3348_v1 }
 0x3ee   : > { %v3360_v3 = vpop.permute.xlu0 %3359  ;;  %v3408_v7 = vpop.permute.xlu1 %3407 }
 0x3ef   : > { %v3491_v18 = vsel %vm3488_vm5, %v3487_v53, %v3360_v3 }
 0x3f2   : > { %v3372_v52 = vpop.permute.xlu0 %3371  ;;  %v3444_v4 = vpop.permute.xlu1 %3443 }
 0x3f3   : > { %v3495_v61 = vsel %vm3492_vm6, %v3491_v18, %v3372_v52 }
 0x3f6   : > { %v3384_v5 = vpop.permute.xlu0 %3383  ;;  %v3456_v12 = vpop.permute.xlu1 %3455 }
 0x3f7   : > { %v3499_v37 = vsel %vm3496_vm7, %v3495_v61, %v3384_v5 }
 0x3fa   : > { %v3396_v26 = vpop.permute.xlu0 %3395  ;;  %v3468_v57 = vpop.permute.xlu1 %3467 }
 0x3fb   : > { %v3502_v33 = vsel %vm3472_vm1, %v3296_v27, %v3396_v26 }
 0x3fc   : > { %v3505_v23 = vsel %vm3476_vm2, %v3502_v33, %v3408_v7 }
 0x3fe   : > { %v3420_v46 = vpop.permute.xlu0 %3419  ;;  %v3464_v45 = vpop.permute.xlu1 %3463 }
 0x3ff   : > { %v3508_v27 = vsel %vm3480_vm3, %v3505_v23, %v3420_v46  ;;  %v3518_v42 = vsel %vm3496_vm7, %v3515_v48, %v3464_v45 }
 0x402   : > { %v3432_v58 = vpop.permute.xlu0 %3431 }
 0x403   : > { %v3511_v31 = vsel %vm3484_vm4, %v3508_v27, %v3432_v58 }
 0x404   : > { %v3514_v15 = vsel %vm3488_vm5, %v3511_v31, %v3444_v4 }
 0x405   : > { %v3517_v8 = vsel %vm3492_vm6, %v3514_v15, %v3456_v12 }
 0x406   : > { %v3368_v30 = vpop.permute.xlu0 %3367  ;;  %v3520_v44 = vsel %vm3496_vm7, %v3517_v8, %v3468_v57 }
 0x407   : > { %3572 = vmatprep.subr.mxu0 %v3520_v44  ;;  %v3493_v17 = vsel %vm3492_vm6, %v4780_v14, %v3368_v30  ;;  %v3522_v14 = vld [vmem:[%s4923_s3 + $0x8] sm:$0xff] }
 0x408   : > { %3573 = vmatpush1.msra.mxu0 %v3499_v37 }
 0x409   : > { %3574 = vmatprep.subr.mxu0 %v3519_v40 }
 0x40a   : > { %3575 = vmatpush1.msra.mxu0 %v3498_v50  ;;  %v3380_v24 = vpop.permute.xlu0 %3379 }
 0x40b   : > { %v3497_v43 = vsel %vm3496_vm7, %v3493_v17, %v3380_v24  ;;  %3576 = vmatprep.subr.mxu0 %v3518_v42 }
 0x40c   : > { %3577 = vmatpush1.msra.mxu0 %v3497_v43 }
 0x40d   : > { %3825 = vmatmul.mubr.msk.f32.vlgmr.msra.gmra.mxu0 %vm3527_vm8, %v3521_v32 }
 0x40e   : > { %3616 = vmatprep.mubr.f32.mxu0 %v4197_v60 }
 0x411   : > { %3826 = vmatmul.mubr.msk.f32.gmra.mxu0 %vm3527_vm8, %v3522_v14 }
 0x412   : > { %3622 = vmatprep.mubr.f32.mxu0 %v4197_v60 }
 0x415   : > { %3827 = vmatmul.mubr.msk.f32.gmra.mxu0 %vm3527_vm8, %v3523_v41 }
 0x416   : > { %3628 = vmatprep.mubr.f32.mxu0 %v4197_v60 }
 0x419   : > { %3828 = vmatmul.mubr.msk.f32.gmra.mxu0 %vm3527_vm8, %v3524_v6 }
 0x41a   : > { %3634 = vmatprep.mubr.f32.mxu0 %v4197_v60 }
 0x41d   : > { %3829 = vmatmul.mubr.msk.f32.gmra.mxu0 %vm3527_vm8, %v3525_v19 }
 0x41e   : > { %3640 = vmatprep.mubr.f32.mxu0 %v4197_v60 }
 0x421   : > { %3830 = vmatmul.mubr.msk.f32.gmra.mxu0 %vm3527_vm8, %v3526_v28 }
 0x4cd   : > { %v3612_v35 = vpop.f32.mrf.mxu0 }
 0x4ce   : > { %3647 = vst [vmem:[%s216_s30] sm:$0xff] %v3612_v35 }
 0x4cf   : > { %v3614_v38 = vpop.f32.mrf.mxu0 }
 0x4d0   : > { %3648 = vst [vmem:[%s216_s30 + $0x8] sm:$0xff] %v3614_v38 }
 0x4d1   : > { %v3618_v59 = vpop.f32.mrf.mxu0 }
 0x4d2   : > { %3649 = vst [vmem:[%s216_s30 + $0x10] sm:$0xff] %v3618_v59 }
 0x4d3   : > { %v3620_v29 = vpop.f32.mrf.mxu0 }
 0x4d4   : > { %3650 = vst [vmem:[%s216_s30 + $0x18] sm:$0xff] %v3620_v29 }
 0x4d5   : > { %v3624_v51 = vpop.f32.mrf.mxu0 }
 0x4d6   : > { %3651 = vst [vmem:[%s216_s30 + $0x20] sm:$0xff] %v3624_v51 }
 0x4d7   : > { %v3626_v60 = vpop.f32.mrf.mxu0 }
 0x4d8   : > { %3652 = vst [vmem:[%s216_s30 + $0x28] sm:$0xff] %v3626_v60 }
 0x4d9   : > { %v3630_v54 = vpop.f32.mrf.mxu0 }
 0x4da   : > { %3653 = vst [vmem:[%s216_s30 + $0x30] sm:$0xff] %v3630_v54 }
 0x4db   : > { %v3632_v49 = vpop.f32.mrf.mxu0 }
 0x4dc   : > { %3654 = vst [vmem:[%s216_s30 + $0x38] sm:$0xff] %v3632_v49 }
 0x4dd   : > { %v3636_v62 = vpop.f32.mrf.mxu0 }
 0x4de   : > { %3655 = vst [vmem:[%s216_s30 + $0x40] sm:$0xff] %v3636_v62 }
 0x4df   : > { %v3638_v0 = vpop.f32.mrf.mxu0 }
 0x4e0   : > { %3656 = vst [vmem:[%s216_s30 + $0x48] sm:$0xff] %v3638_v0 }
 0x4e1   : > { %v3642_v1 = vpop.f32.mrf.mxu0 }
 0x4e2   : > { %3657 = vst [vmem:[%s216_s30 + $0x50] sm:$0xff] %v3642_v1 }
 0x4e3   : > { %v3644_v3 = vpop.f32.mrf.mxu0 }
 0x4e4   : > { %3658 = vst [vmem:[%s216_s30 + $0x58] sm:$0xff] %v3644_v3 }
 0x4e5   : > { %4132 = shalt.err (!%p4129_p10)
}
 0x4e6   : > { %s4133_s10 = scalar_lea.hbm %s4874_s14, 1536  ;;  %s4137_s28 = scalar_lea.hbm %s4924_s4, 3072 }
 0x4e7   : > { %p4134_p0 = scmp.ne.s32.totalorder %s4874_s14, %s4133_s10  ;;  %p4138_p1 = scmp.lt.s32.totalorder %s4874_s14, %s4924_s4 }
 0x4e8   : > { %p4139_p3 = scmp.lt.s32.totalorder %s4137_s28, %s4133_s10 }
 0x4e9   : > { %p4135_p2 = pnand %p4134_p0, %p4932_p12 }
 0x4ea   : > { %p4140_p6 = por %p4139_p3, %p4138_p1 }
 0x4eb   : > { %p4136_p9 = pneg %p4135_p2 }
 0x4ed   : > { %p4141_p11 = pnand %p4140_p6, %p4136_p9 }
 0x4ef   : > { %4144 = shalt.err (!%p4141_p11)
}
 0x4f0   : > { %s4199_s5 = smov 256  }
 0x4f1   : > { %4034 = dma.vmem_to_hbm [thread:$0]  (%p4932_p12), %s4876_s6, 1536, %s4874_s14, %s3660_s20, %s4199_s5, %s4199_s5, %s4191_s22  }
 0x4f2 PF: > { %s3689_s9 = sand.u32 1, %s4171_s15   ;;  %p4933_p13 = scmp.ne.s32.totalorder %s4929_s27, 0 }
 0x4f3   : > { %p4934_p4 = scmp.ge.s32.totalorder %s4183_s18, 2  ;;  %s3690_s13 = scalar_lea.sflag [#allocation4], %s3689_s9 }
 0x4f5   : > { %p4041_p5 = pnand %p4934_p4, %p4933_p13 }
 0x4f7   : > { %p4042_p7 = pneg %p4041_p5 }
 0x4f9   : > { %4166 = dma.done.wait (%p4042_p7), %s3690_s13, 1536  }
 0x4fa   : > { %4168 = vsyncadd (%p4042_p7), %s3690_s13, 4294965760  ;;  %p17_p8 = scmp.ge.s32.totalorder %s4250_s21, 4   ;;  %s4935_s15 = smov %s4175_s16 }
 0x4fb   : > { %s4936_s16 = smov %s4179_s17  ;;  %s4937_s17 = smov %s4262_s24 }
 0x4fc   : > { %s4938_s18 = smov %s4250_s21  ;;  %19 = sbr.rel (!%p17_p8) target bundleno = 5 (0x5), region = 81 }
 0x501   :  { %3695 = vsyncpa [#allocation3], 1 }
 0x502   :  { %3697 = vsyncpa [#allocation3 + $0x1], 1 }
 0x503   :  { %3698 = vsyncpa [#allocation4], 1 }
 0x504   :  { %3700 = vsyncpa [#allocation4 + $0x1], 1 }

</bundles_post_ra>
